<compile_context>
chip_gen: v5e
topology: v5e:2x2
jax: 0.10.0
libtpu: 0.0.40
codegen_flags: <defaults>
</compile_context>

<pallas_src>
import functools

import jax
import jax.numpy as jnp
from jax.experimental import pallas as pl
from jax.experimental.pallas import tpu as pltpu


Z_DIM = 32
H1 = 100
H2 = 300
OUT = 28 * 28           # 784
H1_PAD = 128            # lane-multiple padded hidden widths
H2_PAD = 384


def _round_up(x, m):
    return ((x + m - 1) // m) * m


def decoder_kernel(z_ref, w1_ref, b1_ref, w2_ref, b2_ref, w3_ref, b3_ref,
                   o_ref, *, eup_bf16):
    mm_dtype = w1_ref.dtype  # bf16 (default) or f32

    # Layer 1: Linear(z_dim, 128pad) + ReLU  (padded columns: ReLU(0+0)=0, exact)
    h1 = jnp.dot(z_ref[...].astype(mm_dtype), w1_ref[...],
                 preferred_element_type=jnp.float32)
    h1 = jnp.maximum(h1 + b1_ref[...], 0.0)

    # Layer 2: Linear(128pad, 384pad) + ReLU
    h2 = jnp.dot(h1.astype(mm_dtype), w2_ref[...],
                 preferred_element_type=jnp.float32)
    h2 = jnp.maximum(h2 + b2_ref[...], 0.0)

    # Layer 3: Linear(384pad, 784) + sigmoid (tanh form: single EUP push/elem)
    logits = jnp.dot(h2.astype(mm_dtype), w3_ref[...],
                     preferred_element_type=jnp.float32)
    logits = logits + b3_ref[...]
    if eup_bf16:
        # v6e/v7x have a bf16-capable EUP: halves tanh pushes (opt-in).
        logits = logits.astype(jnp.bfloat16)
    o_ref[...] = (0.5 * (jnp.tanh(0.5 * logits) + 1.0)).astype(o_ref.dtype)


def prepare_params(params, *, use_bf16_matmul=True):
    """One-time prep: zero-pad hidden dims to lane multiples, cast weights.

    Zero padding is exact: padded bias entries are 0 so ReLU(0)=0, and zero
    activation columns contribute exactly 0 to downstream dots.
    """
    w1, b1, w2, b2, w3, b3 = params
    w_dtype = jnp.bfloat16 if use_bf16_matmul else jnp.float32
    w1p = jnp.pad(w1, ((0, 0), (0, H1_PAD - H1))).astype(w_dtype)
    b1p = jnp.pad(b1, ((0, 0), (0, H1_PAD - H1)))                       # f32
    w2p = jnp.pad(w2, ((0, H1_PAD - H1), (0, H2_PAD - H2))).astype(w_dtype)
    b2p = jnp.pad(b2, ((0, 0), (0, H2_PAD - H2)))                       # f32
    w3p = jnp.pad(w3, ((0, H2_PAD - H2), (0, 0))).astype(w_dtype)
    b3p = b3                                                            # f32
    return (w1p, b1p, w2p, b2p, w3p, b3p)


def _choose_batch_tile(B, block_b):
    """Pick the batch tile.

    - B <= 8: one block equal to the full batch dim (always legal layout).
    - Otherwise: a multiple of 8, capped at block_b, sized ~B/n_tiles so the
      ragged tail wastes only a few rows, and forced to >= 2 grid steps once
      B >= 512 so both v7x TensorCores get a "parallel" step.
    """
    if B <= 8:
        return max(B, 1)
    B8 = _round_up(B, 8)
    n_tiles = pl.cdiv(B8, block_b)
    if n_tiles == 1 and B8 >= 512:
        n_tiles = 2
    return _round_up(pl.cdiv(B8, n_tiles), 8)


def decoder_ae_forward(z, params, *, block_b=1024, use_bf16_matmul=True,
                       out_dtype=jnp.float32, eup_bf16=False):
    """Fused decoder forward.  `params` are the raw (unpadded, f32) weights."""
    w1, b1, w2, b2, w3, b3 = prepare_params(params,
                                            use_bf16_matmul=use_bf16_matmul)
    z = z.astype(jnp.float32)

    B, zd = z.shape
    blk = _choose_batch_tile(B, block_b)
    grid = (pl.cdiv(B, blk),)   # ragged last tile handled by Pallas masking

    out_bytes = jnp.dtype(out_dtype).itemsize
    param_bytes = sum(int(p.size) * p.dtype.itemsize
                      for p in (w1, b1, w2, b2, w3, b3))

    # Explicit scoped-VMEM budget: double-buffered in/out tiles + f32
    # intermediates + (worst case double-buffered) weights + headroom.
    # Clamp to <= 48 MiB so we leave room on v7x's 64 MiB physical VMEM.
    vmem_est = (2 * blk * zd * 4
                + 2 * blk * OUT * out_bytes
                + blk * (H1_PAD + H2_PAD + OUT) * 4
                + 2 * param_bytes)
    vmem_limit = int(min(max(vmem_est + (4 << 20), 16 << 20), 48 << 20))

    cost = pl.CostEstimate(
        flops=2 * B * (zd * H1_PAD + H1_PAD * H2_PAD + H2_PAD * OUT),
        transcendentals=B * OUT,
        bytes_accessed=B * zd * 4 + B * OUT * out_bytes + param_bytes,
    )

    def full(shape):
        # Whole-array parameter block; constant (0, 0) index across the grid,
        # so the pipeline does not re-fetch it per step.
        return pl.BlockSpec(shape, lambda i: (0, 0))

    return pl.pallas_call(
        functools.partial(decoder_kernel, eup_bf16=eup_bf16),
        out_shape=jax.ShapeDtypeStruct((B, OUT), out_dtype),
        grid=grid,
        in_specs=[
            pl.BlockSpec((blk, zd), lambda i: (i, 0)),
            full(w1.shape), full(b1.shape),
            full(w2.shape), full(b2.shape),
            full(w3.shape), full(b3.shape),
        ],
        out_specs=pl.BlockSpec((blk, OUT), lambda i: (i, 0)),
        compiler_params=pltpu.CompilerParams(
            dimension_semantics=("parallel",),
            vmem_limit_bytes=vmem_limit,
        ),
        cost_estimate=cost,
    )(z, w1, b1, w2, b2, w3, b3)


def init_params(key, z_dim=Z_DIM):
    """Deterministic parameter init (uniform, like nn.Linear defaults)."""
    ks = jax.random.split(key, 6)

    def linear(kw, kb, fan_in, fan_out):
        bound = 1.0 / jnp.sqrt(fan_in)
        w = jax.random.uniform(kw, (fan_in, fan_out), jnp.float32, -bound, bound)
        b = jax.random.uniform(kb, (1, fan_out), jnp.float32, -bound, bound)
        return w, b

    w1, b1 = linear(ks[0], ks[1], z_dim, H1)
    w2, b2 = linear(ks[2], ks[3], H1, H2)
    w3, b3 = linear(ks[4], ks[5], H2, OUT)
    return (w1, b1, w2, b2, w3, b3)


def decoder_ae_reference(z, params, *, use_bf16_matmul=False):
    """Pure-JAX reference of the PyTorch forward pass (unpadded weights)."""
    w1, b1, w2, b2, w3, b3 = params

    def dot(x, w):
        if use_bf16_matmul:
            x = x.astype(jnp.bfloat16)
            w = w.astype(jnp.bfloat16)
        return jnp.dot(x, w, preferred_element_type=jnp.float32)

    x = jnp.maximum(dot(z, w1) + b1, 0.0)
    x = jnp.maximum(dot(x, w2) + b2, 0.0)
    return jax.nn.sigmoid(dot(x, w3) + b3)


if __name__ == "__main__":
    key = jax.random.PRNGKey(0)
    k_params, k_z = jax.random.split(key)
    params = init_params(k_params)

    # 1) Exact f32 path; B=8 is exactly one tile.
    z8 = jax.random.normal(k_z, (8, Z_DIM), jnp.float32)
    out_f32 = jax.block_until_ready(
        decoder_ae_forward(z8, params, use_bf16_matmul=False))
    ref_f32 = decoder_ae_reference(z8, params, use_bf16_matmul=False)
    assert out_f32.shape == (8, OUT)
    assert jnp.allclose(out_f32, ref_f32, atol=1e-4, rtol=1e-4), \
        "f32 path mismatch vs reference"

    # 2) Default (bf16-matmul) path; B=13 exercises the ragged (masked) tail
    #    tile: no batch padding, no output slice.
    z13 = jax.random.normal(k_z, (13, Z_DIM), jnp.float32)
    out_bf16 = jax.block_until_ready(decoder_ae_forward(z13, params))
    ref_bf16 = decoder_ae_reference(z13, params, use_bf16_matmul=True)
    assert out_bf16.shape == (13, OUT)
    assert jnp.allclose(out_bf16, ref_bf16, atol=2e-3, rtol=2e-2), \
        "bf16 path mismatch vs reference"

    # 3) Multi-tile grid: B=1037 -> blk=520, grid=2 "parallel" steps with a
    #    ragged final tile (validates the main performance path).
    z_big = jax.random.normal(k_z, (1037, Z_DIM), jnp.float32)
    out_big = jax.block_until_ready(decoder_ae_forward(z_big, params))
    ref_big = decoder_ae_reference(z_big, params, use_bf16_matmul=True)
    assert out_big.shape == (1037, OUT)
    assert jnp.allclose(out_big, ref_big, atol=2e-3, rtol=2e-2), \
        "multi-tile path mismatch vs reference"

    print("KERNEL_OK")
</pallas_src>

<mosaic_0001>
module attributes {stable_mosaic.version = 11 : i64} {
  func.func @decoder_kernel(%arg0: i32, %arg1: memref<8x32xf32, #tpu.memory_space<vmem>>, %arg2: memref<32x128xf32, #tpu.memory_space<vmem>>, %arg3: memref<1x128xf32, #tpu.memory_space<vmem>>, %arg4: memref<128x384xf32, #tpu.memory_space<vmem>>, %arg5: memref<1x384xf32, #tpu.memory_space<vmem>>, %arg6: memref<384x784xf32, #tpu.memory_space<vmem>>, %arg7: memref<1x784xf32, #tpu.memory_space<vmem>>, %arg8: memref<8x784xf32, #tpu.memory_space<vmem>>) attributes {dimension_semantics = [#tpu.dimension_semantics<parallel>], iteration_bounds = array<i64: 1>, scalar_prefetch = 0 : i64, scratch_operands = 0 : i64, tpu.core_type = #tpu.core_type<tc>, window_params = [{transform_indices = @transform_0, window_bounds = array<i64: 8, 32>}, {pipeline_mode = #tpu.pipeline_mode<synchronous>, transform_indices = @transform_1, window_bounds = array<i64: 32, 128>}, {pipeline_mode = #tpu.pipeline_mode<synchronous>, transform_indices = @transform_2, window_bounds = array<i64: 1, 128>}, {pipeline_mode = #tpu.pipeline_mode<synchronous>, transform_indices = @transform_3, window_bounds = array<i64: 128, 384>}, {pipeline_mode = #tpu.pipeline_mode<synchronous>, transform_indices = @transform_4, window_bounds = array<i64: 1, 384>}, {pipeline_mode = #tpu.pipeline_mode<synchronous>, transform_indices = @transform_5, window_bounds = array<i64: 384, 784>}, {pipeline_mode = #tpu.pipeline_mode<synchronous>, transform_indices = @transform_6, window_bounds = array<i64: 1, 784>}, {transform_indices = @transform_7, window_bounds = array<i64: 8, 784>}]} {
    %c0 = arith.constant 0 : index
    %c0_0 = arith.constant 0 : index
    %0 = vector.load %arg1[%c0, %c0_0] : memref<8x32xf32, #tpu.memory_space<vmem>>, vector<8x32xf32>
    %c0_1 = arith.constant 0 : index
    %c0_2 = arith.constant 0 : index
    %1 = vector.load %arg2[%c0_1, %c0_2] : memref<32x128xf32, #tpu.memory_space<vmem>>, vector<32x128xf32>
    %cst = arith.constant dense<0.000000e+00> : vector<8x128xf32>
    %2 = tpu.matmul %0, %1, %cst {dimension_numbers = #tpu.dot_dimension_numbers<[1], [0], [0], [1], [0, 0, 1, 1], [], []>} : vector<8x32xf32>, vector<32x128xf32>, vector<8x128xf32> -> vector<8x128xf32>
    %c0_3 = arith.constant 0 : index
    %c0_4 = arith.constant 0 : index
    %3 = vector.load %arg3[%c0_3, %c0_4] : memref<1x128xf32, #tpu.memory_space<vmem>>, vector<1x128xf32>
    %4 = vector.broadcast %3 : vector<1x128xf32> to vector<8x128xf32>
    %5 = arith.addf %2, %4 : vector<8x128xf32>
    %cst_5 = arith.constant 0.000000e+00 : f32
    %6 = vector.broadcast %cst_5 : f32 to vector<8x128xf32>
    %7 = arith.maximumf %5, %6 : vector<8x128xf32>
    %c0_6 = arith.constant 0 : index
    %c0_7 = arith.constant 0 : index
    %8 = vector.load %arg4[%c0_6, %c0_7] : memref<128x384xf32, #tpu.memory_space<vmem>>, vector<128x384xf32>
    %cst_8 = arith.constant dense<0.000000e+00> : vector<8x384xf32>
    %9 = tpu.matmul %7, %8, %cst_8 {dimension_numbers = #tpu.dot_dimension_numbers<[1], [0], [0], [1], [0, 0, 1, 1], [], []>} : vector<8x128xf32>, vector<128x384xf32>, vector<8x384xf32> -> vector<8x384xf32>
    %c0_9 = arith.constant 0 : index
    %c0_10 = arith.constant 0 : index
    %10 = vector.load %arg5[%c0_9, %c0_10] : memref<1x384xf32, #tpu.memory_space<vmem>>, vector<1x384xf32>
    %11 = vector.broadcast %10 : vector<1x384xf32> to vector<8x384xf32>
    %12 = arith.addf %9, %11 : vector<8x384xf32>
    %cst_11 = arith.constant 0.000000e+00 : f32
    %13 = vector.broadcast %cst_11 : f32 to vector<8x384xf32>
    %14 = arith.maximumf %12, %13 : vector<8x384xf32>
    %c0_12 = arith.constant 0 : index
    %c0_13 = arith.constant 0 : index
    %15 = vector.load %arg6[%c0_12, %c0_13] : memref<384x784xf32, #tpu.memory_space<vmem>>, vector<384x784xf32>
    %cst_14 = arith.constant dense<0.000000e+00> : vector<8x784xf32>
    %16 = tpu.matmul %14, %15, %cst_14 {dimension_numbers = #tpu.dot_dimension_numbers<[1], [0], [0], [1], [0, 0, 1, 1], [], []>} : vector<8x384xf32>, vector<384x784xf32>, vector<8x784xf32> -> vector<8x784xf32>
    %c0_15 = arith.constant 0 : index
    %c0_16 = arith.constant 0 : index
    %17 = vector.load %arg7[%c0_15, %c0_16] : memref<1x784xf32, #tpu.memory_space<vmem>>, vector<1x784xf32>
    %18 = vector.broadcast %17 : vector<1x784xf32> to vector<8x784xf32>
    %19 = arith.addf %16, %18 : vector<8x784xf32>
    %cst_17 = arith.constant 5.000000e-01 : f32
    %20 = vector.broadcast %cst_17 : f32 to vector<8x784xf32>
    %21 = arith.mulf %20, %19 : vector<8x784xf32>
    %22 = math.tanh %21 : vector<8x784xf32>
    %cst_18 = arith.constant 1.000000e+00 : f32
    %23 = vector.broadcast %cst_18 : f32 to vector<8x784xf32>
    %24 = arith.addf %22, %23 : vector<8x784xf32>
    %cst_19 = arith.constant 5.000000e-01 : f32
    %25 = vector.broadcast %cst_19 : f32 to vector<8x784xf32>
    %26 = arith.mulf %25, %24 : vector<8x784xf32>
    %c0_20 = arith.constant 0 : index
    %c0_21 = arith.constant 0 : index
    %27 = vector.load %arg8[%c0_20, %c0_21] : memref<8x784xf32, #tpu.memory_space<vmem>>, vector<8x784xf32>
    tpu.vector_store %arg8[%c0_20, %c0_21], %26 {strides = array<i32>} : memref<8x784xf32, #tpu.memory_space<vmem>>, vector<8x784xf32>,
    return
  }
  func.func @transform_0(%arg0: i32) -> (i32, i32) {
    %c0_i32 = arith.constant 0 : i32
    %c0_i32_0 = arith.constant 0 : i32
    return %arg0, %c0_i32 : i32, i32
  }
  func.func @transform_1(%arg0: i32) -> (i32, i32) {
    %c0_i32 = arith.constant 0 : i32
    %c0_i32_0 = arith.constant 0 : i32
    %c0_i32_1 = arith.constant 0 : i32
    return %c0_i32, %c0_i32_0 : i32, i32
  }
  func.func @transform_2(%arg0: i32) -> (i32, i32) {
    %c0_i32 = arith.constant 0 : i32
    %c0_i32_0 = arith.constant 0 : i32
    %c0_i32_1 = arith.constant 0 : i32
    return %c0_i32, %c0_i32_0 : i32, i32
  }
  func.func @transform_3(%arg0: i32) -> (i32, i32) {
    %c0_i32 = arith.constant 0 : i32
    %c0_i32_0 = arith.constant 0 : i32
    %c0_i32_1 = arith.constant 0 : i32
    return %c0_i32, %c0_i32_0 : i32, i32
  }
  func.func @transform_4(%arg0: i32) -> (i32, i32) {
    %c0_i32 = arith.constant 0 : i32
    %c0_i32_0 = arith.constant 0 : i32
    %c0_i32_1 = arith.constant 0 : i32
    return %c0_i32, %c0_i32_0 : i32, i32
  }
  func.func @transform_5(%arg0: i32) -> (i32, i32) {
    %c0_i32 = arith.constant 0 : i32
    %c0_i32_0 = arith.constant 0 : i32
    %c0_i32_1 = arith.constant 0 : i32
    return %c0_i32, %c0_i32_0 : i32, i32
  }
  func.func @transform_6(%arg0: i32) -> (i32, i32) {
    %c0_i32 = arith.constant 0 : i32
    %c0_i32_0 = arith.constant 0 : i32
    %c0_i32_1 = arith.constant 0 : i32
    return %c0_i32, %c0_i32_0 : i32, i32
  }
  func.func @transform_7(%arg0: i32) -> (i32, i32) {
    %c0_i32 = arith.constant 0 : i32
    %c0_i32_0 = arith.constant 0 : i32
    return %arg0, %c0_i32 : i32, i32
  }
}

</mosaic_0001>

<bundles_post_ra>
// kernel: tpu_custom_call.1
= control target key start
LH: loop header
LB: loop body
LE: loop exit
PB: predicated region body
PF: predicated region fallthrough
CT: control target
= control target key end

     0   :  { %vm36_vm0 = vcmask 261120   ;;  %s2303_s0 = inlined_call_operand.vmem [shape: f32[8,32], index: 0, kind: input, shape index: {}]   ;;  %s2304_s1 = inlined_call_operand.vmem [shape: f32[32,128], index: 1, kind: input, shape index: {}]   ;;  %s2305_s2 = inlined_call_operand.vmem [shape: f32[1,128], index: 2, kind: input, shape index: {}]   ;;  %s2306_s3 = inlined_call_operand.vmem [shape: f32[128,384], index: 3, kind: input, shape index: {}]   ;;  %s2307_s4 = inlined_call_operand.vmem [shape: f32[1,384], index: 4, kind: input, shape index: {}]   ;;  %s2308_s5 = inlined_call_operand.vmem [shape: f32[384,784], index: 5, kind: input, shape index: {}]   ;;  %s2309_s6 = inlined_call_operand.vmem [shape: f32[1,784], index: 6, kind: input, shape index: {}]   ;;  %s2310_s7 = inlined_call_operand.hbm [shape: f32[8,784], index: 7, kind: output, shape index: {}]  }
   0x1   :  { %v31_v0 = vld [vmem:[%s2304_s1 + $0x18] sm:$0xff]  ;;  %v30_v1 = vld [vmem:[%s2304_s1 + $0x10] sm:$0xff]  ;;  %v29_v2 = vld [vmem:[%s2304_s1 + $0x8] sm:$0xff] }
   0x2   :  { %52 = vmatpush.msra.mxu0 %v31_v0  ;;  %v106_v3 = vld [vmem:[%s2306_s3 + $0x168] sm:$0xff]  ;;  %v107_v4 = vld [vmem:[%s2306_s3 + $0x170] sm:$0xff]  ;;  %v108_v5 = vld [vmem:[%s2306_s3 + $0x178] sm:$0xff] }
   0x3   :  { %117 = vmatpush.msra.mxu1 %v106_v3  ;;  %v103_v6 = vld [vmem:[%s2306_s3 + $0x150] sm:$0xff]  ;;  %137 = vmatpush.msra.mxu2 %v107_v4  ;;  %v104_v7 = vld [vmem:[%s2306_s3 + $0x158] sm:$0xff]  ;;  %v105_v8 = vld [vmem:[%s2306_s3 + $0x160] sm:$0xff] }
   0x4   :  { %53 = vmatpush.msra.mxu0 %v30_v1  ;;  %v100_v9 = vld [vmem:[%s2306_s3 + $0x138] sm:$0xff]  ;;  %v28_v10 = vld [vmem:[%s2304_s1] sm:$0xff]  ;;  %157 = vmatpush.msra.mxu3 %v108_v5  ;;  %v102_v13 = vld [vmem:[%s2306_s3 + $0x148] sm:$0xff] }
   0x5   :  { %118 = vmatpush.msra.mxu1 %v103_v6  ;;  %v101_v11 = vld [vmem:[%s2306_s3 + $0x140] sm:$0xff]  ;;  %138 = vmatpush.msra.mxu2 %v104_v7  ;;  %v98_v15 = vld [vmem:[%s2306_s3 + $0x128] sm:$0xff]  ;;  %v99_v16 = vld [vmem:[%s2306_s3 + $0x130] sm:$0xff] }
   0x6   :  { %54 = vmatpush.msra.mxu0 %v29_v2  ;;  %v27_v12 = vld [vmem:[%s2303_s0] sm:$0xff]  ;;  %158 = vmatpush.msra.mxu3 %v105_v8  ;;  %v94_v17 = vld [vmem:[%s2306_s3 + $0x108] sm:$0xff]  ;;  %v95_v18 = vld [vmem:[%s2306_s3 + $0x110] sm:$0xff] }
   0x7   :  { %119 = vmatpush.msra.mxu1 %v100_v9  ;;  %v97_v14 = vld [vmem:[%s2306_s3 + $0x120] sm:$0xff]  ;;  %139 = vmatpush.msra.mxu2 %v101_v11  ;;  %v96_v19 = vld [vmem:[%s2306_s3 + $0x118] sm:$0xff]  ;;  %v91_v20 = vld [vmem:[%s2306_s3 + $0xf0] sm:$0xff] }
   0x8   :  { %55 = vmatpush.msra.mxu0 %v28_v10  ;;  %159 = vmatpush.msra.mxu3 %v102_v13  ;;  %v92_v21 = vld [vmem:[%s2306_s3 + $0xf8] sm:$0xff]  ;;  %v93_v22 = vld [vmem:[%s2306_s3 + $0x100] sm:$0xff]  ;;  %v90_v25 = vld [vmem:[%s2306_s3 + $0xe8] sm:$0xff] }
   0x9   :  { %1004 = vmatmul.msk.f32.vlgmr.msra.gmra.mxu0 %vm36_vm0, %v27_v12  ;;  %120 = vmatpush.msra.mxu1 %v97_v14  ;;  %v88_v23 = vld [vmem:[%s2306_s3 + $0xd8] sm:$0xff]  ;;  %v89_v24 = vld [vmem:[%s2306_s3 + $0xe0] sm:$0xff]  ;;  %v86_v27 = vld [vmem:[%s2306_s3 + $0xc8] sm:$0xff] }
   0xa   :  { %140 = vmatpush.msra.mxu2 %v98_v15  ;;  %160 = vmatpush.msra.mxu3 %v99_v16  ;;  %v85_v26 = vld [vmem:[%s2306_s3 + $0xc0] sm:$0xff]  ;;  %v87_v28 = vld [vmem:[%s2306_s3 + $0xd0] sm:$0xff] }
   0xb   :  { %121 = vmatpush.msra.mxu1 %v94_v17 }
   0xc   :  { %141 = vmatpush.msra.mxu2 %v95_v18  ;;  %161 = vmatpush.msra.mxu3 %v96_v19 }
   0xd   :  { %122 = vmatpush.msra.mxu1 %v91_v20 }
   0xe   :  { %142 = vmatpush.msra.mxu2 %v92_v21  ;;  %162 = vmatpush.msra.mxu3 %v93_v22 }
   0xf   :  { %123 = vmatpush.msra.mxu1 %v88_v23 }
  0x10   :  { %143 = vmatpush.msra.mxu2 %v89_v24 }
  0x11   :  { %12 = vsyncpa [#allocation3], 0  ;;  %163 = vmatpush.msra.mxu3 %v90_v25  ;;  %v82_v29 = vld [vmem:[%s2306_s3 + $0xa8] sm:$0xff]  ;;  %v83_v30 = vld [vmem:[%s2306_s3 + $0xb0] sm:$0xff]  ;;  %124 = vmatpush.msra.mxu1 %v85_v26  ;;  %s995_s26 = sshll.u32 %s2310_s7, 4  ;;  %vm986_vm1 = vcmask 130048   ;;  %s996_s26 = int_to_ptr.hbm [resolvable:$true] %s995_s26 }
  0x12   :  { %144 = vmatpush.msra.mxu2 %v86_v27  ;;  %v84_v31 = vld [vmem:[%s2306_s3 + $0xb8] sm:$0xff]  ;;  %v79_v32 = vld [vmem:[%s2306_s3 + $0x90] sm:$0xff]  ;;  %v81_v34 = vld [vmem:[%s2306_s3 + $0xa0] sm:$0xff] }
  0x13   :  { %164 = vmatpush.msra.mxu3 %v87_v28  ;;  %v80_v33 = vld [vmem:[%s2306_s3 + $0x98] sm:$0xff]  ;;  %125 = vmatpush.msra.mxu1 %v82_v29  ;;  %v77_v36 = vld [vmem:[%s2306_s3 + $0x80] sm:$0xff]  ;;  %v78_v37 = vld [vmem:[%s2306_s3 + $0x88] sm:$0xff] }
  0x14   :  { %145 = vmatpush.msra.mxu2 %v83_v30  ;;  %v76_v35 = vld [vmem:[%s2306_s3 + $0x78] sm:$0xff]  ;;  %v73_v38 = vld [vmem:[%s2306_s3 + $0x60] sm:$0xff]  ;;  %v74_v39 = vld [vmem:[%s2306_s3 + $0x68] sm:$0xff] }
  0x15   :  { %165 = vmatpush.msra.mxu3 %v84_v31  ;;  %126 = vmatpush.msra.mxu1 %v79_v32  ;;  %v75_v40 = vld [vmem:[%s2306_s3 + $0x70] sm:$0xff]  ;;  %v70_v41 = vld [vmem:[%s2306_s3 + $0x48] sm:$0xff]  ;;  %v72_v43 = vld [vmem:[%s2306_s3 + $0x58] sm:$0xff] }
  0x16   :  { %146 = vmatpush.msra.mxu2 %v80_v33  ;;  %v71_v42 = vld [vmem:[%s2306_s3 + $0x50] sm:$0xff]  ;;  %v68_v45 = vld [vmem:[%s2306_s3 + $0x38] sm:$0xff]  ;;  %v69_v46 = vld [vmem:[%s2306_s3 + $0x40] sm:$0xff] }
  0x17   :  { %166 = vmatpush.msra.mxu3 %v81_v34  ;;  %127 = vmatpush.msra.mxu1 %v76_v35  ;;  %v67_v44 = vld [vmem:[%s2306_s3 + $0x30] sm:$0xff]  ;;  %v64_v47 = vld [vmem:[%s2306_s3 + $0x18] sm:$0xff]  ;;  %v65_v48 = vld [vmem:[%s2306_s3 + $0x20] sm:$0xff] }
  0x18   :  { %147 = vmatpush.msra.mxu2 %v77_v36  ;;  %v66_v49 = vld [vmem:[%s2306_s3 + $0x28] sm:$0xff]  ;;  %v61_v50 = vld [vmem:[%s2306_s3] sm:$0xff]  ;;  %v63_v52 = vld [vmem:[%s2306_s3 + $0x10] sm:$0xff] }
  0x19   :  { %167 = vmatpush.msra.mxu3 %v78_v37  ;;  %128 = vmatpush.msra.mxu1 %v73_v38  ;;  %v62_v51 = vld [vmem:[%s2306_s3 + $0x8] sm:$0xff]  ;;  %v286_v54 = vld [vmem:[%s2308_s5 + $0x350] sm:$0xff]  ;;  %v279_v56 = vld [vmem:[%s2308_s5 + $0x318] sm:$0xff] }
  0x1a   :  { %148 = vmatpush.msra.mxu2 %v74_v39  ;;  %v285_v53 = vld [vmem:[%s2308_s5 + $0x348] sm:$0xff]  ;;  %v278_v55 = vld [vmem:[%s2308_s5 + $0x310] sm:$0xff]  ;;  %v271_v57 = vld [vmem:[%s2308_s5 + $0x2d8] sm:$0xff] }
  0x1b   :  { %168 = vmatpush.msra.mxu3 %v75_v40  ;;  %129 = vmatpush.msra.mxu1 %v70_v41  ;;  %v272_v58 = vld [vmem:[%s2308_s5 + $0x2e0] sm:$0xff]  ;;  %v397_v59 = vld [vmem:[%s2308_s5 + $0x6c8] sm:$0xff]  ;;  %v390_v61 = vld [vmem:[%s2308_s5 + $0x690] sm:$0xff] }
  0x1c   :  { %149 = vmatpush.msra.mxu2 %v71_v42  ;;  %532 = vmatpush.msrb.mxu0 %v285_v53  ;;  %v509_v60 = vld [vmem:[%s2308_s5 + $0xa48] sm:$0xff]  ;;  %v264_v62 = vld [vmem:[%s2308_s5 + $0x2a0] sm:$0xff]  ;;  %v502_v0 = vld [vmem:[%s2308_s5 + $0xa10] sm:$0xff] }
  0x1d   :  { %169 = vmatpush.msra.mxu3 %v72_v43  ;;  %130 = vmatpush.msra.mxu1 %v67_v44  ;;  %v265_v63 = vld [vmem:[%s2308_s5 + $0x2a8] sm:$0xff]  ;;  %v383_v1 = vld [vmem:[%s2308_s5 + $0x658] sm:$0xff]  ;;  %v258_v4 = vld [vmem:[%s2308_s5 + $0x270] sm:$0xff] }
  0x1e   :  { %150 = vmatpush.msra.mxu2 %v68_v45  ;;  %533 = vmatpush.msrb.mxu0 %v278_v55  ;;  %v495_v2 = vld [vmem:[%s2308_s5 + $0x9d8] sm:$0xff]  ;;  %v257_v3 = vld [vmem:[%s2308_s5 + $0x268] sm:$0xff]  ;;  %v376_v5 = vld [vmem:[%s2308_s5 + $0x620] sm:$0xff] }
  0x1f   :  { %170 = vmatpush.msra.mxu3 %v69_v46  ;;  %131 = vmatpush.msra.mxu1 %v64_v47  ;;  %v488_v6 = vld [vmem:[%s2308_s5 + $0x9a0] sm:$0xff]  ;;  %v250_v7 = vld [vmem:[%s2308_s5 + $0x230] sm:$0xff]  ;;  %v251_v8 = vld [vmem:[%s2308_s5 + $0x238] sm:$0xff] }
  0x20   :  { %151 = vmatpush.msra.mxu2 %v65_v48  ;;  %534 = vmatpush.msrb.mxu0 %v271_v57  ;;  %v369_v9 = vld [vmem:[%s2308_s5 + $0x5e8] sm:$0xff]  ;;  %v243_v11 = vld [vmem:[%s2308_s5 + $0x1f8] sm:$0xff]  ;;  %v244_v12 = vld [vmem:[%s2308_s5 + $0x200] sm:$0xff] }
  0x21   :  { %171 = vmatpush.msra.mxu3 %v66_v49  ;;  %132 = vmatpush.msra.mxu1 %v61_v50  ;;  %v481_v10 = vld [vmem:[%s2308_s5 + $0x968] sm:$0xff]  ;;  %v362_v13 = vld [vmem:[%s2308_s5 + $0x5b0] sm:$0xff]  ;;  %v236_v15 = vld [vmem:[%s2308_s5 + $0x1c0] sm:$0xff] }
  0x22   :  { %152 = vmatpush.msra.mxu2 %v62_v51  ;;  %535 = vmatpush.msrb.mxu0 %v264_v62  ;;  %v474_v14 = vld [vmem:[%s2308_s5 + $0x930] sm:$0xff]  ;;  %v237_v16 = vld [vmem:[%s2308_s5 + $0x1c8] sm:$0xff]  ;;  %v355_v17 = vld [vmem:[%s2308_s5 + $0x578] sm:$0xff] }
  0x23   :  { %172 = vmatpush.msra.mxu3 %v63_v52  ;;  %552 = vmatpush.msrb.mxu1 %v397_v59  ;;  %v467_v18 = vld [vmem:[%s2308_s5 + $0x8f8] sm:$0xff]  ;;  %v229_v19 = vld [vmem:[%s2308_s5 + $0x188] sm:$0xff]  ;;  %v230_v20 = vld [vmem:[%s2308_s5 + $0x190] sm:$0xff] }
  0x24   :  { %572 = vmatpush.msrb.mxu2 %v509_v60  ;;  %536 = vmatpush.msrb.mxu0 %v257_v3  ;;  %v348_v21 = vld [vmem:[%s2308_s5 + $0x540] sm:$0xff]  ;;  %v222_v23 = vld [vmem:[%s2308_s5 + $0x150] sm:$0xff]  ;;  %v223_v24 = vld [vmem:[%s2308_s5 + $0x158] sm:$0xff] }
  0x25   :  { %592 = vmatpush.msrb.mxu3 %v286_v54  ;;  %553 = vmatpush.msrb.mxu1 %v390_v61  ;;  %v460_v22 = vld [vmem:[%s2308_s5 + $0x8c0] sm:$0xff]  ;;  %v341_v25 = vld [vmem:[%s2308_s5 + $0x508] sm:$0xff]  ;;  %v215_v27 = vld [vmem:[%s2308_s5 + $0x118] sm:$0xff] }
  0x26   :  { %573 = vmatpush.msrb.mxu2 %v502_v0  ;;  %537 = vmatpush.msrb.mxu0 %v250_v7  ;;  %v453_v26 = vld [vmem:[%s2308_s5 + $0x888] sm:$0xff]  ;;  %v216_v28 = vld [vmem:[%s2308_s5 + $0x120] sm:$0xff]  ;;  %v334_v29 = vld [vmem:[%s2308_s5 + $0x4d0] sm:$0xff] }
  0x27   :  { %593 = vmatpush.msrb.mxu3 %v279_v56  ;;  %554 = vmatpush.msrb.mxu1 %v383_v1  ;;  %v446_v30 = vld [vmem:[%s2308_s5 + $0x850] sm:$0xff]  ;;  %v208_v31 = vld [vmem:[%s2308_s5 + $0xe0] sm:$0xff]  ;;  %v209_v32 = vld [vmem:[%s2308_s5 + $0xe8] sm:$0xff] }
  0x28   :  { %574 = vmatpush.msrb.mxu2 %v495_v2  ;;  %538 = vmatpush.msrb.mxu0 %v243_v11  ;;  %v327_v33 = vld [vmem:[%s2308_s5 + $0x498] sm:$0xff]  ;;  %v201_v35 = vld [vmem:[%s2308_s5 + $0xa8] sm:$0xff]  ;;  %v202_v36 = vld [vmem:[%s2308_s5 + $0xb0] sm:$0xff] }
  0x29   :  { %594 = vmatpush.msrb.mxu3 %v272_v58  ;;  %555 = vmatpush.msrb.mxu1 %v376_v5  ;;  %v439_v34 = vld [vmem:[%s2308_s5 + $0x818] sm:$0xff]  ;;  %v1006_v37 = vld [vmem:[%s2305_s2] ss:$0 sm:$0xff]  ;;  %v194_v40 = vld [vmem:[%s2308_s5 + $0x70] sm:$0xff] }
  0x2a   :  { %575 = vmatpush.msrb.mxu2 %v488_v6  ;;  %539 = vmatpush.msrb.mxu0 %v236_v15  ;;  %v320_v38 = vld [vmem:[%s2308_s5 + $0x460] sm:$0xff]  ;;  %v195_v41 = vld [vmem:[%s2308_s5 + $0x78] sm:$0xff]  ;;  %v313_v42 = vld [vmem:[%s2308_s5 + $0x428] sm:$0xff] }
  0x2b   :  { %595 = vmatpush.msrb.mxu3 %v265_v63  ;;  %556 = vmatpush.msrb.mxu1 %v369_v9  ;;  %v432_v39 = vld [vmem:[%s2308_s5 + $0x7e0] sm:$0xff]  ;;  %v425_v43 = vld [vmem:[%s2308_s5 + $0x7a8] sm:$0xff]  ;;  %v187_v45 = vld [vmem:[%s2308_s5 + $0x38] sm:$0xff] }
  0x2c   :  { %576 = vmatpush.msrb.mxu2 %v481_v10  ;;  %540 = vmatpush.msrb.mxu0 %v229_v19  ;;  %v188_v46 = vld [vmem:[%s2308_s5 + $0x40] sm:$0xff]  ;;  %v306_v48 = vld [vmem:[%s2308_s5 + $0x3f0] sm:$0xff]  ;;  %v181_v52 = vld [vmem:[%s2308_s5 + $0x8] sm:$0xff] }
  0x2d   :  { %596 = vmatpush.msrb.mxu3 %v258_v4  ;;  %557 = vmatpush.msrb.mxu1 %v362_v13  ;;  %v418_v49 = vld [vmem:[%s2308_s5 + $0x770] sm:$0xff]  ;;  %v180_v51 = vld [vmem:[%s2308_s5] sm:$0xff]  ;;  %v399_v54 = vld [vmem:[%s2308_s5 + $0x6d8] sm:$0xff] }
  0x2e   :  { %577 = vmatpush.msrb.mxu2 %v474_v14  ;;  %541 = vmatpush.msrb.mxu0 %v222_v23  ;;  %v398_v53 = vld [vmem:[%s2308_s5 + $0x6d0] sm:$0xff]  ;;  %v299_v55 = vld [vmem:[%s2308_s5 + $0x3b8] sm:$0xff]  ;;  %v392_v58 = vld [vmem:[%s2308_s5 + $0x6a0] sm:$0xff] }
  0x2f   :  { %597 = vmatpush.msrb.mxu3 %v251_v8  ;;  %558 = vmatpush.msrb.mxu1 %v355_v17  ;;  %v391_v56 = vld [vmem:[%s2308_s5 + $0x698] sm:$0xff]  ;;  %v292_v59 = vld [vmem:[%s2308_s5 + $0x380] sm:$0xff]  ;;  %v385_v62 = vld [vmem:[%s2308_s5 + $0x668] sm:$0xff] }
  0x30   :  { %578 = vmatpush.msrb.mxu2 %v467_v18  ;;  %542 = vmatpush.msrb.mxu0 %v215_v27  ;;  %v411_v57 = vld [vmem:[%s2308_s5 + $0x738] sm:$0xff]  ;;  %v384_v60 = vld [vmem:[%s2308_s5 + $0x660] sm:$0xff]  ;;  %v510_v63 = vld [vmem:[%s2308_s5 + $0xa50] sm:$0xff] }
  0x31   :  { %598 = vmatpush.msrb.mxu3 %v244_v12  ;;  %559 = vmatpush.msrb.mxu1 %v348_v21  ;;  %v404_v61 = vld [vmem:[%s2308_s5 + $0x700] sm:$0xff]  ;;  %v377_v0 = vld [vmem:[%s2308_s5 + $0x628] sm:$0xff]  ;;  %v287_v1 = vld [vmem:[%s2308_s5 + $0x358] sm:$0xff] }
  0x32   :  { %579 = vmatpush.msrb.mxu2 %v460_v22  ;;  %543 = vmatpush.msrb.mxu0 %v208_v31  ;;  %v378_v2 = vld [vmem:[%s2308_s5 + $0x630] sm:$0xff]  ;;  %v503_v3 = vld [vmem:[%s2308_s5 + $0xa18] sm:$0xff]  ;;  %v280_v5 = vld [vmem:[%s2308_s5 + $0x320] sm:$0xff] }
  0x33   :  { %599 = vmatpush.msrb.mxu3 %v237_v16  ;;  %560 = vmatpush.msrb.mxu1 %v341_v25  ;;  %v370_v4 = vld [vmem:[%s2308_s5 + $0x5f0] sm:$0xff]  ;;  %v371_v6 = vld [vmem:[%s2308_s5 + $0x5f8] sm:$0xff]  ;;  %v496_v7 = vld [vmem:[%s2308_s5 + $0x9e0] sm:$0xff] }
  0x34   :  { %580 = vmatpush.msrb.mxu2 %v453_v26  ;;  %544 = vmatpush.msrb.mxu0 %v201_v35  ;;  %v363_v8 = vld [vmem:[%s2308_s5 + $0x5b8] sm:$0xff]  ;;  %v273_v9 = vld [vmem:[%s2308_s5 + $0x2e8] sm:$0xff]  ;;  %v364_v10 = vld [vmem:[%s2308_s5 + $0x5c0] sm:$0xff] }
  0x35   :  { %600 = vmatpush.msrb.mxu3 %v230_v20  ;;  %561 = vmatpush.msrb.mxu1 %v334_v29  ;;  %v489_v11 = vld [vmem:[%s2308_s5 + $0x9a8] sm:$0xff]  ;;  %v356_v12 = vld [vmem:[%s2308_s5 + $0x580] sm:$0xff]  ;;  %v266_v13 = vld [vmem:[%s2308_s5 + $0x2b0] sm:$0xff] }
  0x36   :  { %581 = vmatpush.msrb.mxu2 %v446_v30  ;;  %545 = vmatpush.msrb.mxu0 %v194_v40  ;;  %v357_v14 = vld [vmem:[%s2308_s5 + $0x588] sm:$0xff]  ;;  %v482_v15 = vld [vmem:[%s2308_s5 + $0x970] sm:$0xff]  ;;  %v259_v17 = vld [vmem:[%s2308_s5 + $0x278] sm:$0xff] }
  0x37   :  { %601 = vmatpush.msrb.mxu3 %v223_v24  ;;  %562 = vmatpush.msrb.mxu1 %v327_v33  ;;  %v349_v16 = vld [vmem:[%s2308_s5 + $0x548] sm:$0xff]  ;;  %v350_v18 = vld [vmem:[%s2308_s5 + $0x550] sm:$0xff]  ;;  %v475_v19 = vld [vmem:[%s2308_s5 + $0x938] sm:$0xff] }
  0x38   :  { %582 = vmatpush.msrb.mxu2 %v439_v34  ;;  %546 = vmatpush.msrb.mxu0 %v187_v45  ;;  %v342_v20 = vld [vmem:[%s2308_s5 + $0x510] sm:$0xff]  ;;  %v252_v21 = vld [vmem:[%s2308_s5 + $0x240] sm:$0xff]  ;;  %v343_v22 = vld [vmem:[%s2308_s5 + $0x518] sm:$0xff] }
  0x39   :  { %602 = vmatpush.msrb.mxu3 %v216_v28  ;;  %563 = vmatpush.msrb.mxu1 %v320_v38  ;;  %v468_v23 = vld [vmem:[%s2308_s5 + $0x900] sm:$0xff]  ;;  %v335_v24 = vld [vmem:[%s2308_s5 + $0x4d8] sm:$0xff]  ;;  %v245_v25 = vld [vmem:[%s2308_s5 + $0x208] sm:$0xff] }
  0x3a   :  { %583 = vmatpush.msrb.mxu2 %v432_v39  ;;  %547 = vmatpush.msrb.mxu0 %v180_v51  ;;  %v336_v26 = vld [vmem:[%s2308_s5 + $0x4e0] sm:$0xff]  ;;  %v461_v27 = vld [vmem:[%s2308_s5 + $0x8c8] sm:$0xff]  ;;  %v238_v29 = vld [vmem:[%s2308_s5 + $0x1d0] sm:$0xff] }
  0x3b   :  { %603 = vmatpush.msrb.mxu3 %v209_v32  ;;  %564 = vmatpush.msrb.mxu1 %v313_v42  ;;  %v328_v28 = vld [vmem:[%s2308_s5 + $0x4a0] sm:$0xff]  ;;  %v329_v30 = vld [vmem:[%s2308_s5 + $0x4a8] sm:$0xff]  ;;  %v454_v31 = vld [vmem:[%s2308_s5 + $0x890] sm:$0xff] }
  0x3c   :  { %584 = vmatpush.msrb.mxu2 %v425_v43  ;;  %612 = vmatpush.msra.mxu0 %v398_v53  ;;  %v321_v32 = vld [vmem:[%s2308_s5 + $0x468] sm:$0xff]  ;;  %v231_v33 = vld [vmem:[%s2308_s5 + $0x198] sm:$0xff]  ;;  %v322_v34 = vld [vmem:[%s2308_s5 + $0x470] sm:$0xff] }
  0x3d   :  { %604 = vmatpush.msrb.mxu3 %v202_v36  ;;  %565 = vmatpush.msrb.mxu1 %v306_v48  ;;  %v447_v35 = vld [vmem:[%s2308_s5 + $0x858] sm:$0xff]  ;;  %v314_v36 = vld [vmem:[%s2308_s5 + $0x430] sm:$0xff]  ;;  %v440_v40 = vld [vmem:[%s2308_s5 + $0x820] sm:$0xff] }
  0x3e   :  { %585 = vmatpush.msrb.mxu2 %v418_v49  ;;  %613 = vmatpush.msra.mxu0 %v391_v56  ;;  %v315_v38 = vld [vmem:[%s2308_s5 + $0x438] sm:$0xff]  ;;  %v308_v42 = vld [vmem:[%s2308_s5 + $0x400] sm:$0xff]  ;;  %v210_v45 = vld [vmem:[%s2308_s5 + $0xf0] sm:$0xff] }
  0x3f   :  { %605 = vmatpush.msrb.mxu3 %v195_v41  ;;  %566 = vmatpush.msrb.mxu1 %v299_v55  ;;  %v307_v39 = vld [vmem:[%s2308_s5 + $0x3f8] sm:$0xff]  ;;  %v217_v41 = vld [vmem:[%s2308_s5 + $0x128] sm:$0xff]  ;;  %v300_v43 = vld [vmem:[%s2308_s5 + $0x3c0] sm:$0xff] }
  0x40   :  { %586 = vmatpush.msrb.mxu2 %v411_v57  ;;  %614 = vmatpush.msra.mxu0 %v384_v60  ;;  %v426_v48 = vld [vmem:[%s2308_s5 + $0x7b0] sm:$0xff]  ;;  %v203_v49 = vld [vmem:[%s2308_s5 + $0xb8] sm:$0xff]  ;;  %v412_v53 = vld [vmem:[%s2308_s5 + $0x740] sm:$0xff] }
  0x41   :  { %606 = vmatpush.msrb.mxu3 %v188_v46  ;;  %567 = vmatpush.msrb.mxu1 %v292_v59  ;;  %v301_v46 = vld [vmem:[%s2308_s5 + $0x3c8] sm:$0xff]  ;;  %v419_v51 = vld [vmem:[%s2308_s5 + $0x778] sm:$0xff]  ;;  %v182_v56 = vld [vmem:[%s2308_s5 + $0x10] sm:$0xff] }
  0x42   :  { %587 = vmatpush.msrb.mxu2 %v404_v61  ;;  %615 = vmatpush.msra.mxu0 %v377_v0  ;;  %v405_v55 = vld [vmem:[%s2308_s5 + $0x708] sm:$0xff]  ;;  %v109_v57 = vld [vmem:[%s2307_s4] sm:$0x7] }
  0x43   :  { %607 = vmatpush.msrb.mxu3 %v181_v52  ;;  %v196_v52 = vld [vmem:[%s2308_s5 + $0x80] sm:$0xff]  ;;  %v112_v0 = vperm.slane %v109_v57, 1 }
  0x44   :  { %616 = vmatpush.msra.mxu0 %v370_v4 }
  0x46   :  { %617 = vmatpush.msra.mxu0 %v363_v8  ;;  %v498_v8 = vld [vmem:[%s2308_s5 + $0x9f0] sm:$0xff] }
  0x48   :  { %618 = vmatpush.msra.mxu0 %v356_v12 }
  0x4a   :  { %619 = vmatpush.msra.mxu0 %v349_v16  ;;  %v483_v16 = vld [vmem:[%s2308_s5 + $0x978] sm:$0xff] }
  0x4c   :  { %620 = vmatpush.msra.mxu0 %v342_v20  ;;  %v476_v20 = vld [vmem:[%s2308_s5 + $0x940] sm:$0xff] }
  0x4e   :  { %621 = vmatpush.msra.mxu0 %v335_v24  ;;  %v469_v24 = vld [vmem:[%s2308_s5 + $0x908] sm:$0xff] }
  0x50   :  { %622 = vmatpush.msra.mxu0 %v328_v28  ;;  %v462_v28 = vld [vmem:[%s2308_s5 + $0x8d0] sm:$0xff] }
  0x52   :  { %623 = vmatpush.msra.mxu0 %v321_v32  ;;  %v455_v32 = vld [vmem:[%s2308_s5 + $0x898] sm:$0xff] }
  0x54   :  { %624 = vmatpush.msra.mxu0 %v314_v36  ;;  %v448_v36 = vld [vmem:[%s2308_s5 + $0x860] sm:$0xff] }
  0x56   :  { %625 = vmatpush.msra.mxu0 %v307_v39  ;;  %v449_v39 = vld [vmem:[%s2308_s5 + $0x868] sm:$0xff] }
  0x58   :  { %626 = vmatpush.msra.mxu0 %v300_v43  ;;  %v442_v43 = vld [vmem:[%s2308_s5 + $0x830] sm:$0xff] }
  0x86   :  { %v57_v44 = vpop.f32.mrf.mxu0 }
  0x87   :  { %v58_v47 = vadd.f32 %v1006_v37, %v57_v44  ;;  %v224_v37 = vld [vmem:[%s2308_s5 + $0x160] sm:$0xff]  ;;  %v433_v44 = vld [vmem:[%s2308_s5 + $0x7e8] sm:$0xff] }
  0x89   :  { %v60_v50 = vmax.f32 %v58_v47, 0.0  ;;  %v293_v47 = vld [vmem:[%s2308_s5 + $0x388] sm:$0xff] }
  0x8a   :  { %627 = vmatpush.msra.mxu0 %v293_v47  ;;  %v435_v47 = vld [vmem:[%s2308_s5 + $0x7f8] sm:$0xff] }
  0x8b   :  { %133 = vmatmul.f32.vlgmr.msra.gmra.mxu1 %v60_v50  ;;  %153 = vmatmul.f32.vlgmr.msra.gmra.mxu2 %v60_v50 }
  0x8c   :  { %173 = vmatmul.f32.vlgmr.msra.gmra.mxu3 %v60_v50  ;;  %632 = vmatpush.msra.mxu1 %v510_v63  ;;  %v294_v50 = vld [vmem:[%s2308_s5 + $0x390] sm:$0xff]  ;;  %v512_v63 = vld [vmem:[%s2308_s5 + $0xa60] sm:$0xff] }
  0x8d   :  { %672 = vmatpush.msra.mxu3 %v399_v54  ;;  %652 = vmatpush.msra.mxu2 %v287_v1  ;;  %v189_v54 = vld [vmem:[%s2308_s5 + $0x48] sm:$0xff]  ;;  %v113_v1 = vperm.slane %v109_v57, 2 }
  0x8e   :  { %633 = vmatpush.msra.mxu1 %v503_v3  ;;  %v505_v3 = vld [vmem:[%s2308_s5 + $0xa28] sm:$0xff] }
  0x8f   :  { %673 = vmatpush.msra.mxu3 %v392_v58  ;;  %653 = vmatpush.msra.mxu2 %v280_v5  ;;  %v111_v58 = vperm.slane %v109_v57, 0  ;;  %v211_v57 = vld [vmem:[%s2308_s5 + $0xf8] sm:$0xff] }
  0x90   :  { %634 = vmatpush.msra.mxu1 %v496_v7  ;;  %v497_v7 = vld [vmem:[%s2308_s5 + $0x9e8] sm:$0xff] }
  0x91   :  { %674 = vmatpush.msra.mxu3 %v385_v62  ;;  %654 = vmatpush.msra.mxu2 %v273_v9  ;;  %v511_v62 = vld [vmem:[%s2308_s5 + $0xa58] sm:$0xff] }
  0x92   :  { %635 = vmatpush.msra.mxu1 %v489_v11  ;;  %v490_v11 = vld [vmem:[%s2308_s5 + $0x9b0] sm:$0xff] }
  0x93   :  { %675 = vmatpush.msra.mxu3 %v378_v2  ;;  %655 = vmatpush.msra.mxu2 %v266_v13  ;;  %v504_v2 = vld [vmem:[%s2308_s5 + $0xa20] sm:$0xff] }
  0x94   :  { %636 = vmatpush.msra.mxu1 %v482_v15  ;;  %v288_v13 = vld [vmem:[%s2308_s5 + $0x360] sm:$0xff]  ;;  %v491_v15 = vld [vmem:[%s2308_s5 + $0x9b8] sm:$0xff] }
  0x95   :  { %676 = vmatpush.msra.mxu3 %v371_v6  ;;  %656 = vmatpush.msra.mxu2 %v259_v17  ;;  %v281_v17 = vld [vmem:[%s2308_s5 + $0x328] sm:$0xff] }
  0x96   :  { %637 = vmatpush.msra.mxu1 %v475_v19  ;;  %v484_v19 = vld [vmem:[%s2308_s5 + $0x980] sm:$0xff] }
  0x97   :  { %677 = vmatpush.msra.mxu3 %v364_v10  ;;  %657 = vmatpush.msra.mxu2 %v252_v21  ;;  %v274_v21 = vld [vmem:[%s2308_s5 + $0x2f0] sm:$0xff] }
  0x98   :  { %638 = vmatpush.msra.mxu1 %v468_v23  ;;  %v477_v23 = vld [vmem:[%s2308_s5 + $0x948] sm:$0xff] }
  0x99   :  { %678 = vmatpush.msra.mxu3 %v357_v14  ;;  %658 = vmatpush.msra.mxu2 %v245_v25  ;;  %v400_v14 = vld [vmem:[%s2308_s5 + $0x6e0] sm:$0xff]  ;;  %v267_v25 = vld [vmem:[%s2308_s5 + $0x2b8] sm:$0xff] }
  0x9a   :  { %639 = vmatpush.msra.mxu1 %v461_v27  ;;  %v470_v27 = vld [vmem:[%s2308_s5 + $0x910] sm:$0xff] }
  0x9b   :  { %679 = vmatpush.msra.mxu3 %v350_v18  ;;  %659 = vmatpush.msra.mxu2 %v238_v29  ;;  %v393_v18 = vld [vmem:[%s2308_s5 + $0x6a8] sm:$0xff]  ;;  %v260_v29 = vld [vmem:[%s2308_s5 + $0x280] sm:$0xff] }
  0x9c   :  { %640 = vmatpush.msra.mxu1 %v454_v31  ;;  %v463_v31 = vld [vmem:[%s2308_s5 + $0x8d8] sm:$0xff] }
  0x9d   :  { %680 = vmatpush.msra.mxu3 %v343_v22  ;;  %660 = vmatpush.msra.mxu2 %v231_v33  ;;  %v386_v22 = vld [vmem:[%s2308_s5 + $0x670] sm:$0xff]  ;;  %v253_v33 = vld [vmem:[%s2308_s5 + $0x248] sm:$0xff] }
  0x9e   :  { %641 = vmatpush.msra.mxu1 %v447_v35  ;;  %v456_v35 = vld [vmem:[%s2308_s5 + $0x8a0] sm:$0xff] }
  0x9f   :  { %681 = vmatpush.msra.mxu3 %v336_v26  ;;  %661 = vmatpush.msra.mxu2 %v224_v37  ;;  %v379_v26 = vld [vmem:[%s2308_s5 + $0x638] sm:$0xff]  ;;  %v246_v37 = vld [vmem:[%s2308_s5 + $0x210] sm:$0xff] }
  0xa0   :  { %642 = vmatpush.msra.mxu1 %v440_v40  ;;  %v441_v40 = vld [vmem:[%s2308_s5 + $0x828] sm:$0xff] }
  0xa1   :  { %682 = vmatpush.msra.mxu3 %v329_v30  ;;  %662 = vmatpush.msra.mxu2 %v217_v41  ;;  %v372_v30 = vld [vmem:[%s2308_s5 + $0x600] sm:$0xff]  ;;  %v239_v41 = vld [vmem:[%s2308_s5 + $0x1d8] sm:$0xff] }
  0xa2   :  { %643 = vmatpush.msra.mxu1 %v433_v44  ;;  %v434_v44 = vld [vmem:[%s2308_s5 + $0x7f0] sm:$0xff] }
  0xa3   :  { %683 = vmatpush.msra.mxu3 %v322_v34  ;;  %663 = vmatpush.msra.mxu2 %v210_v45  ;;  %v365_v34 = vld [vmem:[%s2308_s5 + $0x5c8] sm:$0xff]  ;;  %v232_v45 = vld [vmem:[%s2308_s5 + $0x1a0] sm:$0xff] }
  0xa4   :  { %644 = vmatpush.msra.mxu1 %v426_v48  ;;  %v427_v48 = vld [vmem:[%s2308_s5 + $0x7b8] sm:$0xff] }
  0xa5   :  { %684 = vmatpush.msra.mxu3 %v315_v38  ;;  %664 = vmatpush.msra.mxu2 %v203_v49  ;;  %v358_v38 = vld [vmem:[%s2308_s5 + $0x590] sm:$0xff]  ;;  %v225_v49 = vld [vmem:[%s2308_s5 + $0x168] sm:$0xff] }
  0xa6   :  { %645 = vmatpush.msra.mxu1 %v419_v51  ;;  %v428_v51 = vld [vmem:[%s2308_s5 + $0x7c0] sm:$0xff] }
  0xa7   :  { %685 = vmatpush.msra.mxu3 %v308_v42  ;;  %665 = vmatpush.msra.mxu2 %v196_v52  ;;  %v351_v42 = vld [vmem:[%s2308_s5 + $0x558] sm:$0xff]  ;;  %v420_v52 = vld [vmem:[%s2308_s5 + $0x780] sm:$0xff] }
  0xa8   :  { %646 = vmatpush.msra.mxu1 %v412_v53  ;;  %v218_v53 = vld [vmem:[%s2308_s5 + $0x130] sm:$0xff] }
  0xa9   :  { %686 = vmatpush.msra.mxu3 %v301_v46  ;;  %666 = vmatpush.msra.mxu2 %v189_v54  ;;  %v344_v46 = vld [vmem:[%s2308_s5 + $0x520] sm:$0xff]  ;;  %v330_v54 = vld [vmem:[%s2308_s5 + $0x4b0] sm:$0xff] }
  0xaa   :  { %647 = vmatpush.msra.mxu1 %v405_v55  ;;  %v421_v55 = vld [vmem:[%s2308_s5 + $0x788] sm:$0xff] }
  0xab   :  { %687 = vmatpush.msra.mxu3 %v294_v50  ;;  %667 = vmatpush.msra.mxu2 %v182_v56  ;;  %v337_v50 = vld [vmem:[%s2308_s5 + $0x4e8] sm:$0xff] }
  0xac   :  { %v413_v56 = vld [vmem:[%s2308_s5 + $0x748] sm:$0xff] }
 0x108   :  { %v134_v59 = vpop.f32.mrf.mxu1 }
 0x109   :  { %v135_v60 = vadd.f32 %v134_v59, %v111_v58  ;;  %v323_v58 = vld [vmem:[%s2308_s5 + $0x478] sm:$0xff]  ;;  %v414_v59 = vld [vmem:[%s2308_s5 + $0x750] sm:$0xff] }
 0x10b   :  { %v1637_v61 = vmax.f32 %v135_v60, 0.0  ;;  %v406_v60 = vld [vmem:[%s2308_s5 + $0x710] sm:$0xff] }
 0x10d   :  { %548 = vmatmul.f32.vlgmr.msrb.gmra.mxu0 %v1637_v61  ;;  %608 = vmatmul.f32.vlgmr.msrb.gmra.mxu3 %v1637_v61 }
 0x10e   :  { %692 = vmatpush.msrb.mxu0 %v511_v62  ;;  %752 = vmatpush.msrb.mxu3 %v512_v63  ;;  %v154_v4 = vpop.f32.mrf.mxu2  ;;  %v204_v62 = vld [vmem:[%s2308_s5 + $0xc0] sm:$0xff] }
 0x10f   :  { %v155_v5 = vadd.f32 %v154_v4, %v112_v0  ;;  %v174_v6 = vpop.f32.mrf.mxu3  ;;  %v316_v63 = vld [vmem:[%s2308_s5 + $0x440] sm:$0xff]  ;;  %v407_v0 = vld [vmem:[%s2308_s5 + $0x718] sm:$0xff]  ;;  %v309_v4 = vld [vmem:[%s2308_s5 + $0x408] sm:$0xff] }
 0x110   :  { %v175_v9 = vadd.f32 %v174_v6, %v113_v1  ;;  %693 = vmatpush.msrb.mxu0 %v504_v2  ;;  %753 = vmatpush.msrb.mxu3 %v505_v3  ;;  %v289_v1 = vld [vmem:[%s2308_s5 + $0x368] sm:$0xff]  ;;  %v290_v2 = vld [vmem:[%s2308_s5 + $0x370] sm:$0xff]  ;;  %v283_v6 = vld [vmem:[%s2308_s5 + $0x338] sm:$0xff] }
 0x111   :  { %v1659_v10 = vmax.f32 %v155_v5, 0.0  ;;  %v197_v3 = vld [vmem:[%s2308_s5 + $0x88] sm:$0xff]  ;;  %v282_v5 = vld [vmem:[%s2308_s5 + $0x330] sm:$0xff] }
 0x112   :  { %v1664_v12 = vmax.f32 %v175_v9, 0.0  ;;  %694 = vmatpush.msrb.mxu0 %v497_v7  ;;  %754 = vmatpush.msrb.mxu3 %v498_v8  ;;  %v190_v7 = vld [vmem:[%s2308_s5 + $0x50] sm:$0xff]  ;;  %v275_v9 = vld [vmem:[%s2308_s5 + $0x2f8] sm:$0xff] }
 0x113   :  { %568 = vmatmul.f32.vlgmr.msrb.gmra.mxu1 %v1659_v10  ;;  %v302_v8 = vld [vmem:[%s2308_s5 + $0x3d0] sm:$0xff] }
 0x114   :  { %588 = vmatmul.f32.vlgmr.msrb.gmra.mxu2 %v1664_v12  ;;  %695 = vmatpush.msrb.mxu0 %v490_v11  ;;  %v276_v11 = vld [vmem:[%s2308_s5 + $0x300] sm:$0xff] }
 0x115   :  { %712 = vmatpush.msrb.mxu1 %v288_v13  ;;  %732 = vmatpush.msrb.mxu2 %v400_v14  ;;  %v183_v13 = vld [vmem:[%s2308_s5 + $0x18] sm:$0xff] }
 0x116   :  { %755 = vmatpush.msrb.mxu3 %v491_v15  ;;  %628 = vmatmul.f32.vlgmr.msra.gmra.mxu0 %v1659_v10  ;;  %v295_v14 = vld [vmem:[%s2308_s5 + $0x398] sm:$0xff]  ;;  %v268_v15 = vld [vmem:[%s2308_s5 + $0x2c0] sm:$0xff] }
 0x117   :  { %688 = vmatmul.f32.vlgmr.msra.gmra.mxu3 %v1659_v10  ;;  %696 = vmatpush.msrb.mxu0 %v483_v16  ;;  %v401_v16 = vld [vmem:[%s2308_s5 + $0x6e8] sm:$0xff] }
 0x118   :  { %713 = vmatpush.msrb.mxu1 %v281_v17  ;;  %733 = vmatpush.msrb.mxu2 %v393_v18  ;;  %v513_v17 = vld [vmem:[%s2308_s5 + $0xa68] sm:$0xff] }
 0x119   :  { %756 = vmatpush.msrb.mxu3 %v484_v19  ;;  %697 = vmatpush.msrb.mxu0 %v476_v20  ;;  %v269_v18 = vld [vmem:[%s2308_s5 + $0x2c8] sm:$0xff]  ;;  %v394_v20 = vld [vmem:[%s2308_s5 + $0x6b0] sm:$0xff] }
 0x11a   :  { %714 = vmatpush.msrb.mxu1 %v274_v21  ;;  %734 = vmatpush.msrb.mxu2 %v386_v22  ;;  %v261_v19 = vld [vmem:[%s2308_s5 + $0x288] sm:$0xff]  ;;  %v506_v21 = vld [vmem:[%s2308_s5 + $0xa30] sm:$0xff] }
 0x11b   :  { %757 = vmatpush.msrb.mxu3 %v477_v23  ;;  %698 = vmatpush.msrb.mxu0 %v469_v24  ;;  %v262_v22 = vld [vmem:[%s2308_s5 + $0x290] sm:$0xff]  ;;  %v387_v24 = vld [vmem:[%s2308_s5 + $0x678] sm:$0xff] }
 0x11c   :  { %715 = vmatpush.msrb.mxu1 %v267_v25  ;;  %735 = vmatpush.msrb.mxu2 %v379_v26  ;;  %v254_v23 = vld [vmem:[%s2308_s5 + $0x250] sm:$0xff]  ;;  %v499_v25 = vld [vmem:[%s2308_s5 + $0x9f8] sm:$0xff] }
 0x11d   :  { %758 = vmatpush.msrb.mxu3 %v470_v27  ;;  %648 = vmatmul.f32.vlgmr.msra.gmra.mxu1 %v1664_v12  ;;  %v255_v26 = vld [vmem:[%s2308_s5 + $0x258] sm:$0xff] }
 0x11e   :  { %668 = vmatmul.f32.vlgmr.msra.gmra.mxu2 %v1637_v61  ;;  %699 = vmatpush.msrb.mxu0 %v462_v28  ;;  %v247_v27 = vld [vmem:[%s2308_s5 + $0x218] sm:$0xff]  ;;  %v380_v28 = vld [vmem:[%s2308_s5 + $0x640] sm:$0xff] }
 0x11f   :  { %716 = vmatpush.msrb.mxu1 %v260_v29  ;;  %736 = vmatpush.msrb.mxu2 %v372_v30  ;;  %v492_v29 = vld [vmem:[%s2308_s5 + $0x9c0] sm:$0xff] }
 0x120   :  { %759 = vmatpush.msrb.mxu3 %v463_v31  ;;  %700 = vmatpush.msrb.mxu0 %v455_v32  ;;  %v248_v30 = vld [vmem:[%s2308_s5 + $0x220] sm:$0xff]  ;;  %v373_v32 = vld [vmem:[%s2308_s5 + $0x608] sm:$0xff] }
 0x121   :  { %717 = vmatpush.msrb.mxu1 %v253_v33  ;;  %737 = vmatpush.msrb.mxu2 %v365_v34  ;;  %v240_v31 = vld [vmem:[%s2308_s5 + $0x1e0] sm:$0xff]  ;;  %v485_v33 = vld [vmem:[%s2308_s5 + $0x988] sm:$0xff] }
 0x122   :  { %760 = vmatpush.msrb.mxu3 %v456_v35  ;;  %701 = vmatpush.msrb.mxu0 %v448_v36  ;;  %v241_v34 = vld [vmem:[%s2308_s5 + $0x1e8] sm:$0xff]  ;;  %v366_v36 = vld [vmem:[%s2308_s5 + $0x5d0] sm:$0xff] }
 0x123   :  { %718 = vmatpush.msrb.mxu1 %v246_v37  ;;  %738 = vmatpush.msrb.mxu2 %v358_v38  ;;  %v233_v35 = vld [vmem:[%s2308_s5 + $0x1a8] sm:$0xff]  ;;  %v478_v37 = vld [vmem:[%s2308_s5 + $0x950] sm:$0xff] }
 0x124   :  { %761 = vmatpush.msrb.mxu3 %v449_v39  ;;  %702 = vmatpush.msrb.mxu0 %v441_v40  ;;  %v234_v38 = vld [vmem:[%s2308_s5 + $0x1b0] sm:$0xff]  ;;  %v359_v40 = vld [vmem:[%s2308_s5 + $0x598] sm:$0xff] }
 0x125   :  { %719 = vmatpush.msrb.mxu1 %v239_v41  ;;  %739 = vmatpush.msrb.mxu2 %v351_v42  ;;  %v226_v39 = vld [vmem:[%s2308_s5 + $0x170] sm:$0xff]  ;;  %v471_v41 = vld [vmem:[%s2308_s5 + $0x918] sm:$0xff] }
 0x126   :  { %762 = vmatpush.msrb.mxu3 %v442_v43  ;;  %703 = vmatpush.msrb.mxu0 %v434_v44  ;;  %v227_v42 = vld [vmem:[%s2308_s5 + $0x178] sm:$0xff]  ;;  %v352_v44 = vld [vmem:[%s2308_s5 + $0x560] sm:$0xff] }
 0x127   :  { %720 = vmatpush.msrb.mxu1 %v232_v45  ;;  %740 = vmatpush.msrb.mxu2 %v344_v46  ;;  %v219_v43 = vld [vmem:[%s2308_s5 + $0x138] sm:$0xff]  ;;  %v464_v45 = vld [vmem:[%s2308_s5 + $0x8e0] sm:$0xff] }
 0x128   :  { %763 = vmatpush.msrb.mxu3 %v435_v47  ;;  %704 = vmatpush.msrb.mxu0 %v427_v48  ;;  %v220_v46 = vld [vmem:[%s2308_s5 + $0x140] sm:$0xff]  ;;  %v345_v48 = vld [vmem:[%s2308_s5 + $0x528] sm:$0xff] }
 0x129   :  { %721 = vmatpush.msrb.mxu1 %v225_v49  ;;  %741 = vmatpush.msrb.mxu2 %v337_v50  ;;  %v212_v47 = vld [vmem:[%s2308_s5 + $0x100] sm:$0xff]  ;;  %v457_v49 = vld [vmem:[%s2308_s5 + $0x8a8] sm:$0xff] }
 0x12a   :  { %764 = vmatpush.msrb.mxu3 %v428_v51  ;;  %705 = vmatpush.msrb.mxu0 %v420_v52  ;;  %v213_v50 = vld [vmem:[%s2308_s5 + $0x108] sm:$0xff]  ;;  %v338_v52 = vld [vmem:[%s2308_s5 + $0x4f0] sm:$0xff] }
 0x12b   :  { %722 = vmatpush.msrb.mxu1 %v218_v53  ;;  %742 = vmatpush.msrb.mxu2 %v330_v54  ;;  %v205_v51 = vld [vmem:[%s2308_s5 + $0xc8] sm:$0xff]  ;;  %v450_v53 = vld [vmem:[%s2308_s5 + $0x870] sm:$0xff] }
 0x12c   :  { %765 = vmatpush.msrb.mxu3 %v421_v55  ;;  %706 = vmatpush.msrb.mxu0 %v413_v56  ;;  %v206_v54 = vld [vmem:[%s2308_s5 + $0xd0] sm:$0xff]  ;;  %v331_v56 = vld [vmem:[%s2308_s5 + $0x4b8] sm:$0xff] }
 0x12d   :  { %723 = vmatpush.msrb.mxu1 %v211_v57  ;;  %743 = vmatpush.msrb.mxu2 %v323_v58  ;;  %v198_v55 = vld [vmem:[%s2308_s5 + $0x90] sm:$0xff]  ;;  %v443_v57 = vld [vmem:[%s2308_s5 + $0x838] sm:$0xff] }
 0x12e   :  { %766 = vmatpush.msrb.mxu3 %v414_v59  ;;  %707 = vmatpush.msrb.mxu0 %v406_v60  ;;  %v199_v58 = vld [vmem:[%s2308_s5 + $0x98] sm:$0xff]  ;;  %v324_v60 = vld [vmem:[%s2308_s5 + $0x480] sm:$0xff] }
 0x12f   :  { %724 = vmatpush.msrb.mxu1 %v204_v62  ;;  %744 = vmatpush.msrb.mxu2 %v316_v63  ;;  %v191_v59 = vld [vmem:[%s2308_s5 + $0x58] sm:$0xff]  ;;  %v436_v62 = vld [vmem:[%s2308_s5 + $0x800] sm:$0xff] }
 0x130   :  { %767 = vmatpush.msrb.mxu3 %v407_v0  ;;  %708 = vmatmul.f32.vlgmr.msrb.gmra.mxu0 %v1664_v12  ;;  %v192_v63 = vld [vmem:[%s2308_s5 + $0x60] sm:$0xff] }
 0x131   :  { %768 = vmatmul.f32.vlgmr.msrb.gmra.mxu3 %v1664_v12  ;;  %772 = vmatpush.msra.mxu0 %v289_v1  ;;  %v184_v0 = vld [vmem:[%s2308_s5 + $0x20] sm:$0xff]  ;;  %v317_v1 = vld [vmem:[%s2308_s5 + $0x448] sm:$0xff] }
 0x132   :  { %832 = vmatpush.msra.mxu3 %v290_v2  ;;  %725 = vmatpush.msrb.mxu1 %v197_v3  ;;  %v429_v2 = vld [vmem:[%s2308_s5 + $0x7c8] sm:$0xff] }
 0x133   :  { %745 = vmatpush.msrb.mxu2 %v309_v4  ;;  %773 = vmatpush.msra.mxu0 %v282_v5  ;;  %v185_v3 = vld [vmem:[%s2308_s5 + $0x28] sm:$0xff]  ;;  %v402_v4 = vld [vmem:[%s2308_s5 + $0x6f0] sm:$0xff]  ;;  %v403_v5 = vld [vmem:[%s2308_s5 + $0x6f8] sm:$0xff] }
 0x134   :  { %833 = vmatpush.msra.mxu3 %v283_v6  ;;  %726 = vmatpush.msrb.mxu1 %v190_v7  ;;  %v310_v6 = vld [vmem:[%s2308_s5 + $0x410] sm:$0xff] }
 0x135   :  { %746 = vmatpush.msrb.mxu2 %v302_v8  ;;  %774 = vmatpush.msra.mxu0 %v275_v9  ;;  %v422_v7 = vld [vmem:[%s2308_s5 + $0x790] sm:$0xff]  ;;  %v395_v8 = vld [vmem:[%s2308_s5 + $0x6b8] sm:$0xff]  ;;  %v396_v9 = vld [vmem:[%s2308_s5 + $0x6c0] sm:$0xff] }
 0x136   :  { %834 = vmatpush.msra.mxu3 %v276_v11  ;;  %727 = vmatpush.msrb.mxu1 %v183_v13  ;;  %v303_v11 = vld [vmem:[%s2308_s5 + $0x3d8] sm:$0xff] }
 0x137   :  { %747 = vmatpush.msrb.mxu2 %v295_v14  ;;  %728 = vmatmul.f32.vlgmr.msrb.gmra.mxu1 %v1637_v61  ;;  %v415_v13 = vld [vmem:[%s2308_s5 + $0x758] sm:$0xff]  ;;  %v388_v14 = vld [vmem:[%s2308_s5 + $0x680] sm:$0xff] }
 0x138   :  { %748 = vmatmul.f32.vlgmr.msrb.gmra.mxu2 %v1659_v10  ;;  %775 = vmatpush.msra.mxu0 %v268_v15  ;;  %v389_v15 = vld [vmem:[%s2308_s5 + $0x688] sm:$0xff] }
 0x139   :  { %792 = vmatpush.msra.mxu1 %v401_v16  ;;  %812 = vmatpush.msra.mxu2 %v513_v17  ;;  %v296_v16 = vld [vmem:[%s2308_s5 + $0x3a0] sm:$0xff] }
 0x13a   :  { %835 = vmatpush.msra.mxu3 %v269_v18  ;;  %776 = vmatpush.msra.mxu0 %v261_v19  ;;  %v408_v17 = vld [vmem:[%s2308_s5 + $0x720] sm:$0xff]  ;;  %v381_v18 = vld [vmem:[%s2308_s5 + $0x648] sm:$0xff]  ;;  %v514_v19 = vld [vmem:[%s2308_s5 + $0xa70] sm:$0xff] }
 0x13b   :  { %793 = vmatpush.msra.mxu1 %v394_v20  ;;  %813 = vmatpush.msra.mxu2 %v506_v21  ;;  %v291_v20 = vld [vmem:[%s2308_s5 + $0x378] sm:$0xff]  ;;  %v382_v21 = vld [vmem:[%s2308_s5 + $0x650] sm:$0xff] }
 0x13c   :  { %836 = vmatpush.msra.mxu3 %v262_v22  ;;  %777 = vmatpush.msra.mxu0 %v254_v23  ;;  %v374_v22 = vld [vmem:[%s2308_s5 + $0x610] sm:$0xff]  ;;  %v507_v23 = vld [vmem:[%s2308_s5 + $0xa38] sm:$0xff] }
 0x13d   :  { %794 = vmatpush.msra.mxu1 %v387_v24  ;;  %814 = vmatpush.msra.mxu2 %v499_v25  ;;  %v284_v24 = vld [vmem:[%s2308_s5 + $0x340] sm:$0xff]  ;;  %v375_v25 = vld [vmem:[%s2308_s5 + $0x618] sm:$0xff] }
 0x13e   :  { %837 = vmatpush.msra.mxu3 %v255_v26  ;;  %778 = vmatpush.msra.mxu0 %v247_v27  ;;  %v367_v26 = vld [vmem:[%s2308_s5 + $0x5d8] sm:$0xff]  ;;  %v500_v27 = vld [vmem:[%s2308_s5 + $0xa00] sm:$0xff] }
 0x13f   :  { %795 = vmatpush.msra.mxu1 %v380_v28  ;;  %815 = vmatpush.msra.mxu2 %v492_v29  ;;  %v277_v28 = vld [vmem:[%s2308_s5 + $0x308] sm:$0xff]  ;;  %v368_v29 = vld [vmem:[%s2308_s5 + $0x5e0] sm:$0xff] }
 0x140   :  { %838 = vmatpush.msra.mxu3 %v248_v30  ;;  %779 = vmatpush.msra.mxu0 %v240_v31  ;;  %v360_v30 = vld [vmem:[%s2308_s5 + $0x5a0] sm:$0xff]  ;;  %v493_v31 = vld [vmem:[%s2308_s5 + $0x9c8] sm:$0xff] }
 0x141   :  { %796 = vmatpush.msra.mxu1 %v373_v32  ;;  %816 = vmatpush.msra.mxu2 %v485_v33  ;;  %v270_v32 = vld [vmem:[%s2308_s5 + $0x2d0] sm:$0xff]  ;;  %v361_v33 = vld [vmem:[%s2308_s5 + $0x5a8] sm:$0xff] }
 0x142   :  { %839 = vmatpush.msra.mxu3 %v241_v34  ;;  %780 = vmatpush.msra.mxu0 %v233_v35  ;;  %v353_v34 = vld [vmem:[%s2308_s5 + $0x568] sm:$0xff]  ;;  %v486_v35 = vld [vmem:[%s2308_s5 + $0x990] sm:$0xff] }
 0x143   :  { %797 = vmatpush.msra.mxu1 %v366_v36  ;;  %817 = vmatpush.msra.mxu2 %v478_v37  ;;  %v263_v36 = vld [vmem:[%s2308_s5 + $0x298] sm:$0xff]  ;;  %v354_v37 = vld [vmem:[%s2308_s5 + $0x570] sm:$0xff] }
 0x144   :  { %840 = vmatpush.msra.mxu3 %v234_v38  ;;  %781 = vmatpush.msra.mxu0 %v226_v39  ;;  %v346_v38 = vld [vmem:[%s2308_s5 + $0x530] sm:$0xff]  ;;  %v479_v39 = vld [vmem:[%s2308_s5 + $0x958] sm:$0xff] }
 0x145   :  { %798 = vmatpush.msra.mxu1 %v359_v40  ;;  %818 = vmatpush.msra.mxu2 %v471_v41  ;;  %v256_v40 = vld [vmem:[%s2308_s5 + $0x260] sm:$0xff]  ;;  %v347_v41 = vld [vmem:[%s2308_s5 + $0x538] sm:$0xff] }
 0x146   :  { %841 = vmatpush.msra.mxu3 %v227_v42  ;;  %782 = vmatpush.msra.mxu0 %v219_v43  ;;  %v339_v42 = vld [vmem:[%s2308_s5 + $0x4f8] sm:$0xff]  ;;  %v472_v43 = vld [vmem:[%s2308_s5 + $0x920] sm:$0xff] }
 0x147   :  { %799 = vmatpush.msra.mxu1 %v352_v44  ;;  %819 = vmatpush.msra.mxu2 %v464_v45  ;;  %v249_v44 = vld [vmem:[%s2308_s5 + $0x228] sm:$0xff]  ;;  %v340_v45 = vld [vmem:[%s2308_s5 + $0x500] sm:$0xff] }
 0x148   :  { %842 = vmatpush.msra.mxu3 %v220_v46  ;;  %783 = vmatpush.msra.mxu0 %v212_v47  ;;  %v332_v46 = vld [vmem:[%s2308_s5 + $0x4c0] sm:$0xff]  ;;  %v465_v47 = vld [vmem:[%s2308_s5 + $0x8e8] sm:$0xff] }
 0x149   :  { %800 = vmatpush.msra.mxu1 %v345_v48  ;;  %820 = vmatpush.msra.mxu2 %v457_v49  ;;  %v242_v48 = vld [vmem:[%s2308_s5 + $0x1f0] sm:$0xff]  ;;  %v333_v49 = vld [vmem:[%s2308_s5 + $0x4c8] sm:$0xff] }
 0x14a   :  { %843 = vmatpush.msra.mxu3 %v213_v50  ;;  %784 = vmatpush.msra.mxu0 %v205_v51  ;;  %v325_v50 = vld [vmem:[%s2308_s5 + $0x488] sm:$0xff]  ;;  %v458_v51 = vld [vmem:[%s2308_s5 + $0x8b0] sm:$0xff] }
 0x14b   :  { %801 = vmatpush.msra.mxu1 %v338_v52  ;;  %821 = vmatpush.msra.mxu2 %v450_v53  ;;  %v235_v52 = vld [vmem:[%s2308_s5 + $0x1b8] sm:$0xff]  ;;  %v326_v53 = vld [vmem:[%s2308_s5 + $0x490] sm:$0xff] }
 0x14c   :  { %844 = vmatpush.msra.mxu3 %v206_v54  ;;  %785 = vmatpush.msra.mxu0 %v198_v55  ;;  %v318_v54 = vld [vmem:[%s2308_s5 + $0x450] sm:$0xff]  ;;  %v451_v55 = vld [vmem:[%s2308_s5 + $0x878] sm:$0xff] }
 0x14d   :  { %802 = vmatpush.msra.mxu1 %v331_v56  ;;  %822 = vmatpush.msra.mxu2 %v443_v57  ;;  %v228_v56 = vld [vmem:[%s2308_s5 + $0x180] sm:$0xff]  ;;  %v319_v57 = vld [vmem:[%s2308_s5 + $0x458] sm:$0xff] }
 0x14e   :  { %845 = vmatpush.msra.mxu3 %v199_v58  ;;  %786 = vmatpush.msra.mxu0 %v191_v59  ;;  %v311_v58 = vld [vmem:[%s2308_s5 + $0x418] sm:$0xff]  ;;  %v444_v59 = vld [vmem:[%s2308_s5 + $0x840] sm:$0xff] }
 0x14f   :  { %803 = vmatpush.msra.mxu1 %v324_v60  ;;  %823 = vmatpush.msra.mxu2 %v436_v62  ;;  %v221_v60 = vld [vmem:[%s2308_s5 + $0x148] sm:$0xff]  ;;  %v312_v62 = vld [vmem:[%s2308_s5 + $0x420] sm:$0xff] }
 0x150   :  { %846 = vmatpush.msra.mxu3 %v192_v63  ;;  %787 = vmatpush.msra.mxu0 %v184_v0  ;;  %v304_v63 = vld [vmem:[%s2308_s5 + $0x3e0] sm:$0xff]  ;;  %v437_v0 = vld [vmem:[%s2308_s5 + $0x808] sm:$0xff] }
 0x151   :  { %804 = vmatpush.msra.mxu1 %v317_v1  ;;  %824 = vmatpush.msra.mxu2 %v429_v2  ;;  %v214_v1 = vld [vmem:[%s2308_s5 + $0x110] sm:$0xff]  ;;  %v305_v2 = vld [vmem:[%s2308_s5 + $0x3e8] sm:$0xff] }
 0x152   :  { %847 = vmatpush.msra.mxu3 %v185_v3  ;;  %788 = vmatmul.f32.vlgmr.msra.gmra.mxu0 %v1637_v61  ;;  %v297_v3 = vld [vmem:[%s2308_s5 + $0x3a8] sm:$0xff] }
 0x153   :  { %848 = vmatmul.f32.vlgmr.msra.gmra.mxu3 %v1637_v61  ;;  %852 = vmatpush.msrb.mxu0 %v402_v4  ;;  %v430_v4 = vld [vmem:[%s2308_s5 + $0x7d0] sm:$0xff] }
 0x154   :  { %912 = vmatpush.msrb.mxu3 %v403_v5  ;;  %805 = vmatpush.msra.mxu1 %v310_v6  ;;  %v207_v5 = vld [vmem:[%s2308_s5 + $0xd8] sm:$0xff]  ;;  %v298_v6 = vld [vmem:[%s2308_s5 + $0x3b0] sm:$0xff] }
 0x155   :  { %825 = vmatpush.msra.mxu2 %v422_v7  ;;  %853 = vmatpush.msrb.mxu0 %v395_v8  ;;  %v515_v7 = vld [vmem:[%s2308_s5 + $0xa78] sm:$0xff] }
 0x156   :  { %913 = vmatpush.msrb.mxu3 %v396_v9  ;;  %806 = vmatpush.msra.mxu1 %v303_v11  ;;  %v423_v8 = vld [vmem:[%s2308_s5 + $0x798] sm:$0xff]  ;;  %v200_v9 = vld [vmem:[%s2308_s5 + $0xa0] sm:$0xff] }
 0x157   :  { %826 = vmatpush.msra.mxu2 %v415_v13  ;;  %854 = vmatpush.msrb.mxu0 %v388_v14  ;;  %v508_v11 = vld [vmem:[%s2308_s5 + $0xa40] sm:$0xff]  ;;  %v193_v14 = vld [vmem:[%s2308_s5 + $0x68] sm:$0xff] }
 0x158   :  { %914 = vmatpush.msrb.mxu3 %v389_v15  ;;  %807 = vmatpush.msra.mxu1 %v296_v16  ;;  %v416_v13 = vld [vmem:[%s2308_s5 + $0x760] sm:$0xff]  ;;  %v501_v15 = vld [vmem:[%s2308_s5 + $0xa08] sm:$0xff]  ;;  %v186_v16 = vld [vmem:[%s2308_s5 + $0x30] sm:$0xff] }
 0x159   :  { %827 = vmatpush.msra.mxu2 %v408_v17  ;;  %808 = vmatmul.f32.vlgmr.msra.gmra.mxu1 %v1659_v10  ;;  %v494_v17 = vld [vmem:[%s2308_s5 + $0x9d0] sm:$0xff] }
 0x15a   :  { %828 = vmatmul.f32.vlgmr.msra.gmra.mxu2 %v1664_v12  ;;  %855 = vmatpush.msrb.mxu0 %v381_v18  ;;  %v487_v18 = vld [vmem:[%s2308_s5 + $0x998] sm:$0xff] }
 0x15b   :  { %872 = vmatpush.msrb.mxu1 %v514_v19  ;;  %892 = vmatpush.msrb.mxu2 %v291_v20  ;;  %v480_v19 = vld [vmem:[%s2308_s5 + $0x960] sm:$0xff]  ;;  %v473_v20 = vld [vmem:[%s2308_s5 + $0x928] sm:$0xff] }
 0x15c   :  { %915 = vmatpush.msrb.mxu3 %v382_v21  ;;  %856 = vmatpush.msrb.mxu0 %v374_v22  ;;  %v466_v21 = vld [vmem:[%s2308_s5 + $0x8f0] sm:$0xff]  ;;  %v452_v22 = vld [vmem:[%s2308_s5 + $0x880] sm:$0xff] }
 0x15d   :  { %873 = vmatpush.msrb.mxu1 %v507_v23  ;;  %893 = vmatpush.msrb.mxu2 %v284_v24  ;;  %v445_v23 = vld [vmem:[%s2308_s5 + $0x848] sm:$0xff]  ;;  %v438_v24 = vld [vmem:[%s2308_s5 + $0x810] sm:$0xff] }
 0x15e   :  { %916 = vmatpush.msrb.mxu3 %v375_v25  ;;  %857 = vmatpush.msrb.mxu0 %v367_v26  ;;  %v431_v25 = vld [vmem:[%s2308_s5 + $0x7d8] sm:$0xff] }
 0x15f   :  { %874 = vmatpush.msrb.mxu1 %v500_v27  ;;  %894 = vmatpush.msrb.mxu2 %v277_v28  ;;  %v424_v27 = vld [vmem:[%s2308_s5 + $0x7a0] sm:$0xff] }
 0x160   :  { %917 = vmatpush.msrb.mxu3 %v368_v29  ;;  %858 = vmatpush.msrb.mxu0 %v360_v30  ;;  %v2284_v28 = vld [vmem:[%s2309_s6] sm:$0x7f]  ;;  %v417_v29 = vld [vmem:[%s2308_s5 + $0x768] sm:$0xff] }
 0x161   :  { %875 = vmatpush.msrb.mxu1 %v493_v31  ;;  %895 = vmatpush.msrb.mxu2 %v270_v32  ;;  %v518_v30 = vperm.slane %v2284_v28, 0  ;;  %v410_v32 = vld [vmem:[%s2308_s5 + $0x730] sm:$0xff] }
 0x162   :  { %918 = vmatpush.msrb.mxu3 %v361_v33  ;;  %859 = vmatpush.msrb.mxu0 %v353_v34  ;;  %v519_v33 = vperm.slane %v2284_v28, 1 }
 0x163   :  { %876 = vmatpush.msrb.mxu1 %v486_v35  ;;  %896 = vmatpush.msrb.mxu2 %v263_v36 }
 0x164   :  { %919 = vmatpush.msrb.mxu3 %v354_v37  ;;  %860 = vmatpush.msrb.mxu0 %v346_v38 }
 0x165   :  { %877 = vmatpush.msrb.mxu1 %v479_v39  ;;  %897 = vmatpush.msrb.mxu2 %v256_v40 }
 0x166   :  { %920 = vmatpush.msrb.mxu3 %v347_v41  ;;  %861 = vmatpush.msrb.mxu0 %v339_v42 }
 0x167   :  { %878 = vmatpush.msrb.mxu1 %v472_v43  ;;  %898 = vmatpush.msrb.mxu2 %v249_v44 }
 0x168   :  { %921 = vmatpush.msrb.mxu3 %v340_v45  ;;  %862 = vmatpush.msrb.mxu0 %v332_v46 }
 0x169   :  { %879 = vmatpush.msrb.mxu1 %v465_v47  ;;  %899 = vmatpush.msrb.mxu2 %v242_v48  ;;  %v520_v48 = vperm.slane %v2284_v28, 2 }
 0x16a   :  { %922 = vmatpush.msrb.mxu3 %v333_v49  ;;  %863 = vmatpush.msrb.mxu0 %v325_v50 }
 0x16b   :  { %880 = vmatpush.msrb.mxu1 %v458_v51  ;;  %900 = vmatpush.msrb.mxu2 %v235_v52 }
 0x16c   :  { %923 = vmatpush.msrb.mxu3 %v326_v53  ;;  %864 = vmatpush.msrb.mxu0 %v318_v54 }
 0x16d   :  { %881 = vmatpush.msrb.mxu1 %v451_v55  ;;  %901 = vmatpush.msrb.mxu2 %v228_v56 }
 0x16e   :  { %924 = vmatpush.msrb.mxu3 %v319_v57  ;;  %865 = vmatpush.msrb.mxu0 %v311_v58 }
 0x16f   :  { %882 = vmatpush.msrb.mxu1 %v444_v59  ;;  %902 = vmatpush.msrb.mxu2 %v221_v60  ;;  %v521_v59 = vperm.slane %v2284_v28, 3 }
 0x170   :  { %925 = vmatpush.msrb.mxu3 %v312_v62  ;;  %866 = vmatpush.msrb.mxu0 %v304_v63 }
 0x171   :  { %883 = vmatpush.msrb.mxu1 %v437_v0  ;;  %903 = vmatpush.msrb.mxu2 %v214_v1 }
 0x172   :  { %926 = vmatpush.msrb.mxu3 %v305_v2  ;;  %867 = vmatpush.msrb.mxu0 %v297_v3 }
 0x173   :  { %884 = vmatpush.msrb.mxu1 %v430_v4  ;;  %904 = vmatpush.msrb.mxu2 %v207_v5 }
 0x174   :  { %927 = vmatpush.msrb.mxu3 %v298_v6  ;;  %868 = vmatmul.f32.vlgmr.msrb.gmra.mxu0 %v1659_v10 }
 0x175   :  { %928 = vmatmul.f32.vlgmr.msrb.gmra.mxu3 %v1659_v10  ;;  %932 = vmatpush.msra.mxu0 %v515_v7  ;;  %v409_v10 = vld [vmem:[%s2308_s5 + $0x728] sm:$0xff] }
 0x176   :  { %885 = vmatpush.msrb.mxu1 %v423_v8  ;;  %905 = vmatpush.msrb.mxu2 %v200_v9 }
 0x177   :  { %933 = vmatpush.msra.mxu0 %v508_v11  ;;  %v522_v11 = vperm.slane %v2284_v28, 4 }
 0x178   :  { %886 = vmatpush.msrb.mxu1 %v416_v13  ;;  %906 = vmatpush.msrb.mxu2 %v193_v14 }
 0x179   :  { %934 = vmatpush.msra.mxu0 %v501_v15 }
 0x17a   :  { %887 = vmatpush.msrb.mxu1 %v409_v10  ;;  %907 = vmatpush.msrb.mxu2 %v186_v16 }
 0x17b   :  { %888 = vmatmul.f32.vlgmr.msrb.gmra.mxu1 %v1664_v12  ;;  %908 = vmatmul.f32.vlgmr.msrb.gmra.mxu2 %v1637_v61  ;;  %v459_v61 = vld [vmem:[%s2308_s5 + $0x8b8] sm:$0xff]  ;;  %s1047_s5 = smov [#allocation2]  }
 0x17c   :  { %935 = vmatpush.msra.mxu0 %v494_v17  ;;  %s993_s6 = sshll.u32 %s1047_s5, 4  ;;  %s994_s6 = int_to_ptr.vmem [resolvable:$true] %s993_s6 }
 0x17e   :  { %936 = vmatpush.msra.mxu0 %v487_v18 }
 0x180   :  { %937 = vmatpush.msra.mxu0 %v480_v19 }
 0x182   :  { %938 = vmatpush.msra.mxu0 %v473_v20 }
 0x184   :  { %939 = vmatpush.msra.mxu0 %v466_v21 }
 0x186   :  { %940 = vmatpush.msra.mxu0 %v459_v61  ;;  %v523_v61 = vperm.slane %v2284_v28, 5 }
 0x188   :  { %941 = vmatpush.msra.mxu0 %v452_v22 }
 0x18a   :  { %942 = vmatpush.msra.mxu0 %v445_v23  ;;  %v549_v26 = vpop.f32.mrf.mxu0 }
 0x18b   :  { %v550_v35 = vadd.f32 %v549_v26, %v518_v30 }
 0x18c   :  { %943 = vmatpush.msra.mxu0 %v438_v24 }
 0x18e   :  { %944 = vmatpush.msra.mxu0 %v431_v25 }
 0x190   :  { %945 = vmatpush.msra.mxu0 %v424_v27  ;;  %v569_v31 = vpop.f32.mrf.mxu1  ;;  %v609_v34 = vpop.f32.mrf.mxu3 }
 0x191   :  { %v610_v36 = vadd.f32 %v609_v34, %v519_v33  ;;  %v570_v37 = vadd.f32 %v569_v31, %v550_v35  ;;  %v524_v33 = vperm.slane %v2284_v28, 6 }
 0x192   :  { %946 = vmatpush.msra.mxu0 %v417_v29 }
 0x193   :  { %v629_v38 = vpop.f32.mrf.mxu0 }
 0x194   :  { %947 = vmatpush.msra.mxu0 %v410_v32  ;;  %v630_v41 = vadd.f32 %v629_v38, %v610_v36 }
 0x195   :  { %948 = vmatmul.f32.vlgmr.msra.gmra.mxu0 %v1664_v12 }
 0x197   :  { %v589_v39 = vpop.f32.mrf.mxu2 }
 0x198   :  { %v590_v40 = vadd.f32 %v589_v39, %v570_v37 }
 0x19a   :  { %v952_v42 = vmul.f32 0.5, %v590_v40  ;;  %v649_v43 = vpop.f32.mrf.mxu1  ;;  %v689_v54 = vpop.f32.mrf.mxu3 }
 0x19b   :  { %v650_v44 = vadd.f32 %v649_v43, %v630_v41 }
 0x19c   :  { %1007 = vtanh.f32 %v952_v42 }
 0x19d   :  { %v953_v45 = vmul.f32 0.5, %v650_v44 }
 0x19f   :  { %1009 = vtanh.f32 %v953_v45 }
 0x1a1   :  { %v669_v51 = vpop.f32.mrf.mxu2 }
 0x1a2   :  { %v1008_v46 = vpop.eup %1007  ;;  %v670_v53 = vadd.f32 %v669_v51, %v520_v48 }
 0x1a3   :  { %v966_v47 = vadd.f32 1.0, %v1008_v46 }
 0x1a4   :  { %v690_v55 = vadd.f32 %v689_v54, %v670_v53 }
 0x1a5   :  { %v1010_v49 = vpop.eup %1009  ;;  %v973_v50 = vmul.f32 0.5, %v966_v47 }
 0x1a6   :  { %v967_v12 = vadd.f32 1.0, %v1010_v49 }
 0x1a7   :  { %980 = vst [vmem:[#allocation2] sm:$0xff] %v973_v50 }
 0x1a8   :  { %v974_v52 = vmul.f32 0.5, %v967_v12 }
 0x1aa   :  { %981 = vst [vmem:[#allocation2 + $0x8] sm:$0xff] %v974_v52 }
 0x1ad   :  { %v709_v56 = vpop.f32.mrf.mxu0 }
 0x1ae   :  { %v710_v57 = vadd.f32 %v709_v56, %v690_v55 }
 0x1b0   :  { %v954_v58 = vmul.f32 0.5, %v710_v57 }
 0x1b2   :  { %1011 = vtanh.f32 %v954_v58 }
 0x1b4   :  { %v729_v60 = vpop.f32.mrf.mxu1  ;;  %v769_v4 = vpop.f32.mrf.mxu3 }
 0x1b5   :  { %v730_v0 = vadd.f32 %v729_v60, %v521_v59 }
 0x1b8   :  { %v1012_v62 = vpop.eup %1011 }
 0x1b9   :  { %v968_v63 = vadd.f32 1.0, %v1012_v62 }
 0x1bb   :  { %v975_v1 = vmul.f32 0.5, %v968_v63  ;;  %v749_v2 = vpop.f32.mrf.mxu2 }
 0x1bc   :  { %v750_v3 = vadd.f32 %v749_v2, %v730_v0 }
 0x1bd   :  { %982 = vst [vmem:[#allocation2 + $0x10] sm:$0xff] %v975_v1 }
 0x1be   :  { %v770_v5 = vadd.f32 %v769_v4, %v750_v3 }
 0x1c0   :  { %v955_v6 = vmul.f32 0.5, %v770_v5 }
 0x1c2   :  { %1013 = vtanh.f32 %v955_v6 }
 0x1c8   :  { %v1014_v7 = vpop.eup %1013 }
 0x1c9   :  { %v969_v8 = vadd.f32 1.0, %v1014_v7 }
 0x1cb   :  { %v976_v9 = vmul.f32 0.5, %v969_v8 }
 0x1cd   :  { %983 = vst [vmem:[#allocation2 + $0x18] sm:$0xff] %v976_v9 }
 0x1cf   :  { %v789_v13 = vpop.f32.mrf.mxu0 }
 0x1d0   :  { %v790_v15 = vadd.f32 %v789_v13, %v522_v11 }
 0x1d6   :  { %v809_v14 = vpop.f32.mrf.mxu1  ;;  %v849_v22 = vpop.f32.mrf.mxu3 }
 0x1d7   :  { %v810_v10 = vadd.f32 %v809_v14, %v790_v15  ;;  %v850_v24 = vadd.f32 %v849_v22, %v523_v61 }
 0x1dd   :  { %v829_v16 = vpop.f32.mrf.mxu2 }
 0x1de   :  { %v830_v17 = vadd.f32 %v829_v16, %v810_v10 }
 0x1e0   :  { %v956_v18 = vmul.f32 0.5, %v830_v17 }
 0x1e2   :  { %1015 = vtanh.f32 %v956_v18 }
 0x1e8   :  { %v1016_v19 = vpop.eup %1015 }
 0x1e9   :  { %v970_v20 = vadd.f32 1.0, %v1016_v19 }
 0x1eb   :  { %v977_v21 = vmul.f32 0.5, %v970_v20 }
 0x1ed   :  { %984 = vst [vmem:[#allocation2 + $0x20] sm:$0xff] %v977_v21 }
 0x1f1   :  { %v869_v23 = vpop.f32.mrf.mxu0 }
 0x1f2   :  { %v870_v25 = vadd.f32 %v869_v23, %v850_v24 }
 0x1f8   :  { %v889_v26 = vpop.f32.mrf.mxu1  ;;  %v929_v36 = vpop.f32.mrf.mxu3 }
 0x1f9   :  { %v890_v27 = vadd.f32 %v889_v26, %v870_v25 }
 0x1fb   :  { %v957_v29 = vmul.f32 0.5, %v890_v27 }
 0x1fd   :  { %1017 = vtanh.f32 %v957_v29 }
 0x1fe   :  { %v909_v34 = vpop.f32.mrf.mxu2 }
 0x1ff   :  { %v910_v35 = vadd.f32 %v909_v34, %v524_v33 }
 0x201   :  { %v930_v37 = vadd.f32 %v929_v36, %v910_v35 }
 0x203   :  { %v1018_v30 = vpop.eup %1017 }
 0x204   :  { %v971_v31 = vadd.f32 1.0, %v1018_v30 }
 0x206   :  { %v978_v32 = vmul.f32 0.5, %v971_v31 }
 0x208   :  { %985 = vst [vmem:[#allocation2 + $0x28] sm:$0xff] %v978_v32 }
 0x212   :  { %v949_v38 = vpop.f32.mrf.mxu0 }
 0x213   :  { %v950_v39 = vadd.f32 %v949_v38, %v930_v37 }
 0x215   :  { %v958_v40 = vmul.f32 0.5, %v950_v39 }
 0x217   :  { %1019 = vtanh.f32 %v958_v40 }
 0x21d   :  { %v1020_v41 = vpop.eup %1019 }
 0x21e   :  { %v972_v42 = vadd.f32 1.0, %v1020_v41 }
 0x220   :  { %v979_v43 = vmul.f32 0.5, %v972_v42 }
 0x222   :  { %987 = vst.msk [vmem:[#allocation2 + $0x30] sm:$0xff] %vm986_vm1, %v979_v43 }
 0x223   :  { %998 = dma.vmem_to_hbm [thread:$0]  %s994_s6, 896, %s996_s26, [#allocation3]  }
 0x224   :  { %1045 = dma.done.wait [#allocation3], 896  }
 0x225   :  { %1046 = vsyncadd [#allocation3], 4294966400 }
 0x226   :  { %1003 = vsyncpa [#allocation3], 1 }

</bundles_post_ra>
